<compile_context>
chip_gen: v7x
topology: tpu7x:2x2x1
jax: 0.10.0
libtpu: 0.0.40
codegen_flags: <defaults>
</compile_context>

<pallas_src>
import functools

import jax
import jax.numpy as jnp
from jax.experimental import pallas as pl
from jax.experimental.pallas import tpu as pltpu

_LANES = 128


def _freblock_kernel(xr_ref, xi_ref,
                     wm1_ref, bm1_ref, wm2_ref, bm2_ref,
                     wp1_ref, bp1_ref, wp2_ref, bp2_ref,
                     or_ref, oi_ref):
    # xr_ref / xi_ref / or_ref / oi_ref: (1, C, rows_per_tile, 128) VMEM blocks
    # w*_ref: flat (C*C,) f32 in SMEM, b*_ref: (C,) f32 in SMEM
    C = xr_ref.shape[1]

    def conv1x1(rows, w_ref, b_ref):
        # y[co] = b[co] + sum_ci w[co, ci] * x[ci]  -- VPU broadcast-FMAs on
        # lane-dense (rows_per_tile, 128) slabs; weights read as SMEM scalars.
        out = []
        for co in range(C):
            acc = b_ref[co] + w_ref[co * C] * rows[0]
            for ci in range(1, C):
                acc = acc + w_ref[co * C + ci] * rows[ci]
            out.append(acc)
        return out

    def lrelu(rows):
        return [jnp.where(r >= 0, r, 0.1 * r) for r in rows]

    xr = [xr_ref[0, c] for c in range(C)]   # each (rows_per_tile, 128)
    xi = [xi_ref[0, c] for c in range(C)]

    # torch.abs(x) / torch.angle(x)
    mag = [jnp.sqrt(r * r + i * i) for r, i in zip(xr, xi)]
    pha = [jnp.arctan2(i, r) for r, i in zip(xr, xi)]

    # processmag / processpha: Conv1x1 -> LeakyReLU(0.1) -> Conv1x1
    mag_o = conv1x1(lrelu(conv1x1(mag, wm1_ref, bm1_ref)), wm2_ref, bm2_ref)
    pha_o = conv1x1(lrelu(conv1x1(pha, wp1_ref, bp1_ref)), wp2_ref, bp2_ref)

    # real/imag recombination; per-channel stores are full lane-dense slabs.
    for c in range(C):
        or_ref[0, c] = mag_o[c] * jnp.cos(pha_o[c])
        oi_ref[0, c] = mag_o[c] * jnp.sin(pha_o[c])


@functools.partial(jax.jit, static_argnames=("tile_rows",))
def freblock_forward(x_complex, params, tile_rows=64):
    """x_complex: complex64 (B, C, H, W). Returns complex64 (B, C, H, W)."""
    B, C, H, W = x_complex.shape
    if C > 32:
        # TODO(synk): for large nc (>=~64) add an MXU variant (pixels-on-rows
        # layout, W @ X on the systolic array) instead of the VPU unroll.
        raise NotImplementedError("freblock_forward VPU path expects nc <= 32")

    hw = H * W
    rows = -(-hw // _LANES)                       # ceil(H*W / 128) pixel-rows
    if rows <= tile_rows:
        rows_per_tile = rows                      # full extent (small inputs)
    else:
        rows_per_tile = max(8, (tile_rows // 8) * 8)
    rows_pad = -(-rows // rows_per_tile) * rows_per_tile
    hw_pad = rows_pad * _LANES

    # NCHW -> (B, C, H*W) is layout-free; pad pixel axis only if needed.
    xr = jnp.real(x_complex).astype(jnp.float32).reshape(B, C, hw)
    xi = jnp.imag(x_complex).astype(jnp.float32).reshape(B, C, hw)
    if hw_pad != hw:
        pad = ((0, 0), (0, 0), (0, hw_pad - hw))
        xr = jnp.pad(xr, pad)
        xi = jnp.pad(xi, pad)
    xr = xr.reshape(B, C, rows_pad, _LANES)
    xi = xi.reshape(B, C, rows_pad, _LANES)

    # Flatten weights/biases for SMEM (1-D avoids SMEM 2-D padding blow-up).
    flat = lambda a: a.astype(jnp.float32).reshape(-1)
    wm1, bm1 = flat(params["wm1"]), flat(params["bm1"])
    wm2, bm2 = flat(params["wm2"]), flat(params["bm2"])
    wp1, bp1 = flat(params["wp1"]), flat(params["bp1"])
    wp2, bp2 = flat(params["wp2"]), flat(params["bp2"])

    data_spec = pl.BlockSpec((1, C, rows_per_tile, _LANES),
                             lambda b, t: (b, 0, t, 0))
    smem_spec = pl.BlockSpec(memory_space=pltpu.MemorySpace.SMEM)

    out_r, out_i = pl.pallas_call(
        _freblock_kernel,
        out_shape=(jax.ShapeDtypeStruct((B, C, rows_pad, _LANES), jnp.float32),
                   jax.ShapeDtypeStruct((B, C, rows_pad, _LANES), jnp.float32)),
        grid=(B, rows_pad // rows_per_tile),
        in_specs=[data_spec, data_spec] + [smem_spec] * 8,
        out_specs=(data_spec, data_spec),
        compiler_params=pltpu.CompilerParams(
            dimension_semantics=("parallel", "parallel"),
            vmem_limit_bytes=32 * 1024 * 1024),
    )(xr, xi, wm1, bm1, wm2, bm2, wp1, bp1, wp2, bp2)

    out_r = out_r.reshape(B, C, hw_pad)[:, :, :hw].reshape(B, C, H, W)
    out_i = out_i.reshape(B, C, hw_pad)[:, :, :hw].reshape(B, C, H, W)
    return jax.lax.complex(out_r, out_i)


def init_freblock_params(nc, key):
    """Deterministic init mimicking PyTorch Conv2d default (uniform +-1/sqrt(fan_in))."""
    bound = 1.0 / jnp.sqrt(float(nc))
    keys = jax.random.split(key, 8)
    u = lambda k, shape: jax.random.uniform(k, shape, jnp.float32, -bound, bound)
    return {
        "wm1": u(keys[0], (nc, nc)), "bm1": u(keys[1], (nc,)),
        "wm2": u(keys[2], (nc, nc)), "bm2": u(keys[3], (nc,)),
        "wp1": u(keys[4], (nc, nc)), "bp1": u(keys[5], (nc,)),
        "wp2": u(keys[6], (nc, nc)), "bp2": u(keys[7], (nc,)),
    }


def freblock_reference(x_complex, params):
    """Pure-JAX reference of the PyTorch forward (NCHW, 1x1 convs as einsum)."""
    xr = jnp.real(x_complex)
    xi = jnp.imag(x_complex)
    mag = jnp.sqrt(xr * xr + xi * xi)
    pha = jnp.arctan2(xi, xr)

    def conv1x1(x, w, b):  # x: (B,C,H,W), w: (Cout,Cin)
        return jnp.einsum("oc,bchw->bohw", w, x) + b[None, :, None, None]

    lrelu = lambda t: jnp.where(t >= 0, t, 0.1 * t)
    m = conv1x1(lrelu(conv1x1(mag, params["wm1"], params["bm1"])),
                params["wm2"], params["bm2"])
    p = conv1x1(lrelu(conv1x1(pha, params["wp1"], params["bp1"])),
                params["wp2"], params["bp2"])
    return jax.lax.complex(m * jnp.cos(p), m * jnp.sin(p))


if __name__ == "__main__":
    B, C, H, W = 2, 4, 16, 16
    key = jax.random.PRNGKey(0)
    kx, kr, ki = jax.random.split(key, 3)

    params = init_freblock_params(C, kx)
    x_re = jax.random.normal(kr, (B, C, H, W), jnp.float32)
    x_im = jax.random.normal(ki, (B, C, H, W), jnp.float32)
    x = jax.lax.complex(x_re, x_im)

    out = jax.block_until_ready(freblock_forward(x, params))
    ref = freblock_reference(x, params)

    assert out.shape == (B, C, H, W) and out.dtype == jnp.complex64
    err = float(jnp.max(jnp.abs(out - ref)))
    assert err < 2e-4, f"mismatch vs reference: {err}"
    print("KERNEL_OK")
</pallas_src>

<mosaic_0001>
module attributes {stable_mosaic.version = 11 : i64} {
  func.func @_freblock_kernel(%arg0: i32, %arg1: i32, %arg2: memref<1x4x2x128xf32, #tpu.memory_space<vmem>>, %arg3: memref<1x4x2x128xf32, #tpu.memory_space<vmem>>, %arg4: memref<16xf32, #tpu.memory_space<smem>>, %arg5: memref<4xf32, #tpu.memory_space<smem>>, %arg6: memref<16xf32, #tpu.memory_space<smem>>, %arg7: memref<4xf32, #tpu.memory_space<smem>>, %arg8: memref<16xf32, #tpu.memory_space<smem>>, %arg9: memref<4xf32, #tpu.memory_space<smem>>, %arg10: memref<16xf32, #tpu.memory_space<smem>>, %arg11: memref<4xf32, #tpu.memory_space<smem>>, %arg12: memref<1x4x2x128xf32, #tpu.memory_space<vmem>>, %arg13: memref<1x4x2x128xf32, #tpu.memory_space<vmem>>) attributes {dimension_semantics = [#tpu.dimension_semantics<parallel>, #tpu.dimension_semantics<parallel>], iteration_bounds = array<i64: 2, 1>, scalar_prefetch = 0 : i64, scratch_operands = 0 : i64, tpu.core_type = #tpu.core_type<tc>, window_params = [{transform_indices = @transform_0, window_bounds = array<i64: 1, 4, 2, 128>}, {transform_indices = @transform_1, window_bounds = array<i64: 1, 4, 2, 128>}, {transform_indices = @transform_2, window_bounds = array<i64: 16>}, {transform_indices = @transform_3, window_bounds = array<i64: 4>}, {transform_indices = @transform_4, window_bounds = array<i64: 16>}, {transform_indices = @transform_5, window_bounds = array<i64: 4>}, {transform_indices = @transform_6, window_bounds = array<i64: 16>}, {transform_indices = @transform_7, window_bounds = array<i64: 4>}, {transform_indices = @transform_8, window_bounds = array<i64: 16>}, {transform_indices = @transform_9, window_bounds = array<i64: 4>}, {transform_indices = @transform_10, window_bounds = array<i64: 1, 4, 2, 128>}, {transform_indices = @transform_11, window_bounds = array<i64: 1, 4, 2, 128>}]} {
    %c0 = arith.constant 0 : index
    %c0_0 = arith.constant 0 : index
    %c0_1 = arith.constant 0 : index
    %c0_2 = arith.constant 0 : index
    %0 = vector.load %arg2[%c0, %c0_0, %c0_1, %c0_2] : memref<1x4x2x128xf32, #tpu.memory_space<vmem>>, vector<1x1x2x128xf32>
    %1 = vector.shape_cast %0 : vector<1x1x2x128xf32> to vector<2x128xf32>
    %c0_3 = arith.constant 0 : index
    %c1 = arith.constant 1 : index
    %c0_4 = arith.constant 0 : index
    %c0_5 = arith.constant 0 : index
    %2 = vector.load %arg2[%c0_3, %c1, %c0_4, %c0_5] : memref<1x4x2x128xf32, #tpu.memory_space<vmem>>, vector<1x1x2x128xf32>
    %3 = vector.shape_cast %2 : vector<1x1x2x128xf32> to vector<2x128xf32>
    %c0_6 = arith.constant 0 : index
    %c2 = arith.constant 2 : index
    %c0_7 = arith.constant 0 : index
    %c0_8 = arith.constant 0 : index
    %4 = vector.load %arg2[%c0_6, %c2, %c0_7, %c0_8] : memref<1x4x2x128xf32, #tpu.memory_space<vmem>>, vector<1x1x2x128xf32>
    %5 = vector.shape_cast %4 : vector<1x1x2x128xf32> to vector<2x128xf32>
    %c0_9 = arith.constant 0 : index
    %c3 = arith.constant 3 : index
    %c0_10 = arith.constant 0 : index
    %c0_11 = arith.constant 0 : index
    %6 = vector.load %arg2[%c0_9, %c3, %c0_10, %c0_11] : memref<1x4x2x128xf32, #tpu.memory_space<vmem>>, vector<1x1x2x128xf32>
    %7 = vector.shape_cast %6 : vector<1x1x2x128xf32> to vector<2x128xf32>
    %c0_12 = arith.constant 0 : index
    %c0_13 = arith.constant 0 : index
    %c0_14 = arith.constant 0 : index
    %c0_15 = arith.constant 0 : index
    %8 = vector.load %arg3[%c0_12, %c0_13, %c0_14, %c0_15] : memref<1x4x2x128xf32, #tpu.memory_space<vmem>>, vector<1x1x2x128xf32>
    %9 = vector.shape_cast %8 : vector<1x1x2x128xf32> to vector<2x128xf32>
    %c0_16 = arith.constant 0 : index
    %c1_17 = arith.constant 1 : index
    %c0_18 = arith.constant 0 : index
    %c0_19 = arith.constant 0 : index
    %10 = vector.load %arg3[%c0_16, %c1_17, %c0_18, %c0_19] : memref<1x4x2x128xf32, #tpu.memory_space<vmem>>, vector<1x1x2x128xf32>
    %11 = vector.shape_cast %10 : vector<1x1x2x128xf32> to vector<2x128xf32>
    %c0_20 = arith.constant 0 : index
    %c2_21 = arith.constant 2 : index
    %c0_22 = arith.constant 0 : index
    %c0_23 = arith.constant 0 : index
    %12 = vector.load %arg3[%c0_20, %c2_21, %c0_22, %c0_23] : memref<1x4x2x128xf32, #tpu.memory_space<vmem>>, vector<1x1x2x128xf32>
    %13 = vector.shape_cast %12 : vector<1x1x2x128xf32> to vector<2x128xf32>
    %c0_24 = arith.constant 0 : index
    %c3_25 = arith.constant 3 : index
    %c0_26 = arith.constant 0 : index
    %c0_27 = arith.constant 0 : index
    %14 = vector.load %arg3[%c0_24, %c3_25, %c0_26, %c0_27] : memref<1x4x2x128xf32, #tpu.memory_space<vmem>>, vector<1x1x2x128xf32>
    %15 = vector.shape_cast %14 : vector<1x1x2x128xf32> to vector<2x128xf32>
    %16 = arith.mulf %1, %1 : vector<2x128xf32>
    %17 = arith.mulf %9, %9 : vector<2x128xf32>
    %18 = arith.addf %16, %17 : vector<2x128xf32>
    %19 = math.sqrt %18 : vector<2x128xf32>
    %20 = arith.mulf %3, %3 : vector<2x128xf32>
    %21 = arith.mulf %11, %11 : vector<2x128xf32>
    %22 = arith.addf %20, %21 : vector<2x128xf32>
    %23 = math.sqrt %22 : vector<2x128xf32>
    %24 = arith.mulf %5, %5 : vector<2x128xf32>
    %25 = arith.mulf %13, %13 : vector<2x128xf32>
    %26 = arith.addf %24, %25 : vector<2x128xf32>
    %27 = math.sqrt %26 : vector<2x128xf32>
    %28 = arith.mulf %7, %7 : vector<2x128xf32>
    %29 = arith.mulf %15, %15 : vector<2x128xf32>
    %30 = arith.addf %28, %29 : vector<2x128xf32>
    %31 = math.sqrt %30 : vector<2x128xf32>
    %32 = math.atan2 %9, %1 : vector<2x128xf32>
    %33 = math.atan2 %11, %3 : vector<2x128xf32>
    %34 = math.atan2 %13, %5 : vector<2x128xf32>
    %35 = math.atan2 %15, %7 : vector<2x128xf32>
    %c0_28 = arith.constant 0 : index
    %36 = memref.load %arg5[%c0_28] : memref<4xf32, #tpu.memory_space<smem>>
    %c0_29 = arith.constant 0 : index
    %37 = memref.load %arg4[%c0_29] : memref<16xf32, #tpu.memory_space<smem>>
    %38 = vector.broadcast %37 : f32 to vector<2x128xf32>
    %39 = arith.mulf %38, %19 : vector<2x128xf32>
    %40 = vector.broadcast %36 : f32 to vector<2x128xf32>
    %41 = arith.addf %40, %39 : vector<2x128xf32>
    %c1_30 = arith.constant 1 : index
    %42 = memref.load %arg4[%c1_30] : memref<16xf32, #tpu.memory_space<smem>>
    %43 = vector.broadcast %42 : f32 to vector<2x128xf32>
    %44 = arith.mulf %43, %23 : vector<2x128xf32>
    %45 = arith.addf %41, %44 : vector<2x128xf32>
    %c2_31 = arith.constant 2 : index
    %46 = memref.load %arg4[%c2_31] : memref<16xf32, #tpu.memory_space<smem>>
    %47 = vector.broadcast %46 : f32 to vector<2x128xf32>
    %48 = arith.mulf %47, %27 : vector<2x128xf32>
    %49 = arith.addf %45, %48 : vector<2x128xf32>
    %c3_32 = arith.constant 3 : index
    %50 = memref.load %arg4[%c3_32] : memref<16xf32, #tpu.memory_space<smem>>
    %51 = vector.broadcast %50 : f32 to vector<2x128xf32>
    %52 = arith.mulf %51, %31 : vector<2x128xf32>
    %53 = arith.addf %49, %52 : vector<2x128xf32>
    %c1_33 = arith.constant 1 : index
    %54 = memref.load %arg5[%c1_33] : memref<4xf32, #tpu.memory_space<smem>>
    %c4 = arith.constant 4 : index
    %55 = memref.load %arg4[%c4] : memref<16xf32, #tpu.memory_space<smem>>
    %56 = vector.broadcast %55 : f32 to vector<2x128xf32>
    %57 = arith.mulf %56, %19 : vector<2x128xf32>
    %58 = vector.broadcast %54 : f32 to vector<2x128xf32>
    %59 = arith.addf %58, %57 : vector<2x128xf32>
    %c5 = arith.constant 5 : index
    %60 = memref.load %arg4[%c5] : memref<16xf32, #tpu.memory_space<smem>>
    %61 = vector.broadcast %60 : f32 to vector<2x128xf32>
    %62 = arith.mulf %61, %23 : vector<2x128xf32>
    %63 = arith.addf %59, %62 : vector<2x128xf32>
    %c6 = arith.constant 6 : index
    %64 = memref.load %arg4[%c6] : memref<16xf32, #tpu.memory_space<smem>>
    %65 = vector.broadcast %64 : f32 to vector<2x128xf32>
    %66 = arith.mulf %65, %27 : vector<2x128xf32>
    %67 = arith.addf %63, %66 : vector<2x128xf32>
    %c7 = arith.constant 7 : index
    %68 = memref.load %arg4[%c7] : memref<16xf32, #tpu.memory_space<smem>>
    %69 = vector.broadcast %68 : f32 to vector<2x128xf32>
    %70 = arith.mulf %69, %31 : vector<2x128xf32>
    %71 = arith.addf %67, %70 : vector<2x128xf32>
    %c2_34 = arith.constant 2 : index
    %72 = memref.load %arg5[%c2_34] : memref<4xf32, #tpu.memory_space<smem>>
    %c8 = arith.constant 8 : index
    %73 = memref.load %arg4[%c8] : memref<16xf32, #tpu.memory_space<smem>>
    %74 = vector.broadcast %73 : f32 to vector<2x128xf32>
    %75 = arith.mulf %74, %19 : vector<2x128xf32>
    %76 = vector.broadcast %72 : f32 to vector<2x128xf32>
    %77 = arith.addf %76, %75 : vector<2x128xf32>
    %c9 = arith.constant 9 : index
    %78 = memref.load %arg4[%c9] : memref<16xf32, #tpu.memory_space<smem>>
    %79 = vector.broadcast %78 : f32 to vector<2x128xf32>
    %80 = arith.mulf %79, %23 : vector<2x128xf32>
    %81 = arith.addf %77, %80 : vector<2x128xf32>
    %c10 = arith.constant 10 : index
    %82 = memref.load %arg4[%c10] : memref<16xf32, #tpu.memory_space<smem>>
    %83 = vector.broadcast %82 : f32 to vector<2x128xf32>
    %84 = arith.mulf %83, %27 : vector<2x128xf32>
    %85 = arith.addf %81, %84 : vector<2x128xf32>
    %c11 = arith.constant 11 : index
    %86 = memref.load %arg4[%c11] : memref<16xf32, #tpu.memory_space<smem>>
    %87 = vector.broadcast %86 : f32 to vector<2x128xf32>
    %88 = arith.mulf %87, %31 : vector<2x128xf32>
    %89 = arith.addf %85, %88 : vector<2x128xf32>
    %c3_35 = arith.constant 3 : index
    %90 = memref.load %arg5[%c3_35] : memref<4xf32, #tpu.memory_space<smem>>
    %c12 = arith.constant 12 : index
    %91 = memref.load %arg4[%c12] : memref<16xf32, #tpu.memory_space<smem>>
    %92 = vector.broadcast %91 : f32 to vector<2x128xf32>
    %93 = arith.mulf %92, %19 : vector<2x128xf32>
    %94 = vector.broadcast %90 : f32 to vector<2x128xf32>
    %95 = arith.addf %94, %93 : vector<2x128xf32>
    %c13 = arith.constant 13 : index
    %96 = memref.load %arg4[%c13] : memref<16xf32, #tpu.memory_space<smem>>
    %97 = vector.broadcast %96 : f32 to vector<2x128xf32>
    %98 = arith.mulf %97, %23 : vector<2x128xf32>
    %99 = arith.addf %95, %98 : vector<2x128xf32>
    %c14 = arith.constant 14 : index
    %100 = memref.load %arg4[%c14] : memref<16xf32, #tpu.memory_space<smem>>
    %101 = vector.broadcast %100 : f32 to vector<2x128xf32>
    %102 = arith.mulf %101, %27 : vector<2x128xf32>
    %103 = arith.addf %99, %102 : vector<2x128xf32>
    %c15 = arith.constant 15 : index
    %104 = memref.load %arg4[%c15] : memref<16xf32, #tpu.memory_space<smem>>
    %105 = vector.broadcast %104 : f32 to vector<2x128xf32>
    %106 = arith.mulf %105, %31 : vector<2x128xf32>
    %107 = arith.addf %103, %106 : vector<2x128xf32>
    %cst = arith.constant 0.000000e+00 : f32
    %108 = vector.broadcast %cst : f32 to vector<2x128xf32>
    %109 = arith.cmpf oge, %53, %108 : vector<2x128xf32>
    %cst_36 = arith.constant 1.000000e-01 : f32
    %110 = vector.broadcast %cst_36 : f32 to vector<2x128xf32>
    %111 = arith.mulf %110, %53 : vector<2x128xf32>
    %112 = arith.select %109, %53, %111 : vector<2x128xi1>, vector<2x128xf32>
    %cst_37 = arith.constant 0.000000e+00 : f32
    %113 = vector.broadcast %cst_37 : f32 to vector<2x128xf32>
    %114 = arith.cmpf oge, %71, %113 : vector<2x128xf32>
    %cst_38 = arith.constant 1.000000e-01 : f32
    %115 = vector.broadcast %cst_38 : f32 to vector<2x128xf32>
    %116 = arith.mulf %115, %71 : vector<2x128xf32>
    %117 = arith.select %114, %71, %116 : vector<2x128xi1>, vector<2x128xf32>
    %cst_39 = arith.constant 0.000000e+00 : f32
    %118 = vector.broadcast %cst_39 : f32 to vector<2x128xf32>
    %119 = arith.cmpf oge, %89, %118 : vector<2x128xf32>
    %cst_40 = arith.constant 1.000000e-01 : f32
    %120 = vector.broadcast %cst_40 : f32 to vector<2x128xf32>
    %121 = arith.mulf %120, %89 : vector<2x128xf32>
    %122 = arith.select %119, %89, %121 : vector<2x128xi1>, vector<2x128xf32>
    %cst_41 = arith.constant 0.000000e+00 : f32
    %123 = vector.broadcast %cst_41 : f32 to vector<2x128xf32>
    %124 = arith.cmpf oge, %107, %123 : vector<2x128xf32>
    %cst_42 = arith.constant 1.000000e-01 : f32
    %125 = vector.broadcast %cst_42 : f32 to vector<2x128xf32>
    %126 = arith.mulf %125, %107 : vector<2x128xf32>
    %127 = arith.select %124, %107, %126 : vector<2x128xi1>, vector<2x128xf32>
    %c0_43 = arith.constant 0 : index
    %128 = memref.load %arg7[%c0_43] : memref<4xf32, #tpu.memory_space<smem>>
    %c0_44 = arith.constant 0 : index
    %129 = memref.load %arg6[%c0_44] : memref<16xf32, #tpu.memory_space<smem>>
    %130 = vector.broadcast %129 : f32 to vector<2x128xf32>
    %131 = arith.mulf %130, %112 : vector<2x128xf32>
    %132 = vector.broadcast %128 : f32 to vector<2x128xf32>
    %133 = arith.addf %132, %131 : vector<2x128xf32>
    %c1_45 = arith.constant 1 : index
    %134 = memref.load %arg6[%c1_45] : memref<16xf32, #tpu.memory_space<smem>>
    %135 = vector.broadcast %134 : f32 to vector<2x128xf32>
    %136 = arith.mulf %135, %117 : vector<2x128xf32>
    %137 = arith.addf %133, %136 : vector<2x128xf32>
    %c2_46 = arith.constant 2 : index
    %138 = memref.load %arg6[%c2_46] : memref<16xf32, #tpu.memory_space<smem>>
    %139 = vector.broadcast %138 : f32 to vector<2x128xf32>
    %140 = arith.mulf %139, %122 : vector<2x128xf32>
    %141 = arith.addf %137, %140 : vector<2x128xf32>
    %c3_47 = arith.constant 3 : index
    %142 = memref.load %arg6[%c3_47] : memref<16xf32, #tpu.memory_space<smem>>
    %143 = vector.broadcast %142 : f32 to vector<2x128xf32>
    %144 = arith.mulf %143, %127 : vector<2x128xf32>
    %145 = arith.addf %141, %144 : vector<2x128xf32>
    %c1_48 = arith.constant 1 : index
    %146 = memref.load %arg7[%c1_48] : memref<4xf32, #tpu.memory_space<smem>>
    %c4_49 = arith.constant 4 : index
    %147 = memref.load %arg6[%c4_49] : memref<16xf32, #tpu.memory_space<smem>>
    %148 = vector.broadcast %147 : f32 to vector<2x128xf32>
    %149 = arith.mulf %148, %112 : vector<2x128xf32>
    %150 = vector.broadcast %146 : f32 to vector<2x128xf32>
    %151 = arith.addf %150, %149 : vector<2x128xf32>
    %c5_50 = arith.constant 5 : index
    %152 = memref.load %arg6[%c5_50] : memref<16xf32, #tpu.memory_space<smem>>
    %153 = vector.broadcast %152 : f32 to vector<2x128xf32>
    %154 = arith.mulf %153, %117 : vector<2x128xf32>
    %155 = arith.addf %151, %154 : vector<2x128xf32>
    %c6_51 = arith.constant 6 : index
    %156 = memref.load %arg6[%c6_51] : memref<16xf32, #tpu.memory_space<smem>>
    %157 = vector.broadcast %156 : f32 to vector<2x128xf32>
    %158 = arith.mulf %157, %122 : vector<2x128xf32>
    %159 = arith.addf %155, %158 : vector<2x128xf32>
    %c7_52 = arith.constant 7 : index
    %160 = memref.load %arg6[%c7_52] : memref<16xf32, #tpu.memory_space<smem>>
    %161 = vector.broadcast %160 : f32 to vector<2x128xf32>
    %162 = arith.mulf %161, %127 : vector<2x128xf32>
    %163 = arith.addf %159, %162 : vector<2x128xf32>
    %c2_53 = arith.constant 2 : index
    %164 = memref.load %arg7[%c2_53] : memref<4xf32, #tpu.memory_space<smem>>
    %c8_54 = arith.constant 8 : index
    %165 = memref.load %arg6[%c8_54] : memref<16xf32, #tpu.memory_space<smem>>
    %166 = vector.broadcast %165 : f32 to vector<2x128xf32>
    %167 = arith.mulf %166, %112 : vector<2x128xf32>
    %168 = vector.broadcast %164 : f32 to vector<2x128xf32>
    %169 = arith.addf %168, %167 : vector<2x128xf32>
    %c9_55 = arith.constant 9 : index
    %170 = memref.load %arg6[%c9_55] : memref<16xf32, #tpu.memory_space<smem>>
    %171 = vector.broadcast %170 : f32 to vector<2x128xf32>
    %172 = arith.mulf %171, %117 : vector<2x128xf32>
    %173 = arith.addf %169, %172 : vector<2x128xf32>
    %c10_56 = arith.constant 10 : index
    %174 = memref.load %arg6[%c10_56] : memref<16xf32, #tpu.memory_space<smem>>
    %175 = vector.broadcast %174 : f32 to vector<2x128xf32>
    %176 = arith.mulf %175, %122 : vector<2x128xf32>
    %177 = arith.addf %173, %176 : vector<2x128xf32>
    %c11_57 = arith.constant 11 : index
    %178 = memref.load %arg6[%c11_57] : memref<16xf32, #tpu.memory_space<smem>>
    %179 = vector.broadcast %178 : f32 to vector<2x128xf32>
    %180 = arith.mulf %179, %127 : vector<2x128xf32>
    %181 = arith.addf %177, %180 : vector<2x128xf32>
    %c3_58 = arith.constant 3 : index
    %182 = memref.load %arg7[%c3_58] : memref<4xf32, #tpu.memory_space<smem>>
    %c12_59 = arith.constant 12 : index
    %183 = memref.load %arg6[%c12_59] : memref<16xf32, #tpu.memory_space<smem>>
    %184 = vector.broadcast %183 : f32 to vector<2x128xf32>
    %185 = arith.mulf %184, %112 : vector<2x128xf32>
    %186 = vector.broadcast %182 : f32 to vector<2x128xf32>
    %187 = arith.addf %186, %185 : vector<2x128xf32>
    %c13_60 = arith.constant 13 : index
    %188 = memref.load %arg6[%c13_60] : memref<16xf32, #tpu.memory_space<smem>>
    %189 = vector.broadcast %188 : f32 to vector<2x128xf32>
    %190 = arith.mulf %189, %117 : vector<2x128xf32>
    %191 = arith.addf %187, %190 : vector<2x128xf32>
    %c14_61 = arith.constant 14 : index
    %192 = memref.load %arg6[%c14_61] : memref<16xf32, #tpu.memory_space<smem>>
    %193 = vector.broadcast %192 : f32 to vector<2x128xf32>
    %194 = arith.mulf %193, %122 : vector<2x128xf32>
    %195 = arith.addf %191, %194 : vector<2x128xf32>
    %c15_62 = arith.constant 15 : index
    %196 = memref.load %arg6[%c15_62] : memref<16xf32, #tpu.memory_space<smem>>
    %197 = vector.broadcast %196 : f32 to vector<2x128xf32>
    %198 = arith.mulf %197, %127 : vector<2x128xf32>
    %199 = arith.addf %195, %198 : vector<2x128xf32>
    %c0_63 = arith.constant 0 : index
    %200 = memref.load %arg9[%c0_63] : memref<4xf32, #tpu.memory_space<smem>>
    %c0_64 = arith.constant 0 : index
    %201 = memref.load %arg8[%c0_64] : memref<16xf32, #tpu.memory_space<smem>>
    %202 = vector.broadcast %201 : f32 to vector<2x128xf32>
    %203 = arith.mulf %202, %32 : vector<2x128xf32>
    %204 = vector.broadcast %200 : f32 to vector<2x128xf32>
    %205 = arith.addf %204, %203 : vector<2x128xf32>
    %c1_65 = arith.constant 1 : index
    %206 = memref.load %arg8[%c1_65] : memref<16xf32, #tpu.memory_space<smem>>
    %207 = vector.broadcast %206 : f32 to vector<2x128xf32>
    %208 = arith.mulf %207, %33 : vector<2x128xf32>
    %209 = arith.addf %205, %208 : vector<2x128xf32>
    %c2_66 = arith.constant 2 : index
    %210 = memref.load %arg8[%c2_66] : memref<16xf32, #tpu.memory_space<smem>>
    %211 = vector.broadcast %210 : f32 to vector<2x128xf32>
    %212 = arith.mulf %211, %34 : vector<2x128xf32>
    %213 = arith.addf %209, %212 : vector<2x128xf32>
    %c3_67 = arith.constant 3 : index
    %214 = memref.load %arg8[%c3_67] : memref<16xf32, #tpu.memory_space<smem>>
    %215 = vector.broadcast %214 : f32 to vector<2x128xf32>
    %216 = arith.mulf %215, %35 : vector<2x128xf32>
    %217 = arith.addf %213, %216 : vector<2x128xf32>
    %c1_68 = arith.constant 1 : index
    %218 = memref.load %arg9[%c1_68] : memref<4xf32, #tpu.memory_space<smem>>
    %c4_69 = arith.constant 4 : index
    %219 = memref.load %arg8[%c4_69] : memref<16xf32, #tpu.memory_space<smem>>
    %220 = vector.broadcast %219 : f32 to vector<2x128xf32>
    %221 = arith.mulf %220, %32 : vector<2x128xf32>
    %222 = vector.broadcast %218 : f32 to vector<2x128xf32>
    %223 = arith.addf %222, %221 : vector<2x128xf32>
    %c5_70 = arith.constant 5 : index
    %224 = memref.load %arg8[%c5_70] : memref<16xf32, #tpu.memory_space<smem>>
    %225 = vector.broadcast %224 : f32 to vector<2x128xf32>
    %226 = arith.mulf %225, %33 : vector<2x128xf32>
    %227 = arith.addf %223, %226 : vector<2x128xf32>
    %c6_71 = arith.constant 6 : index
    %228 = memref.load %arg8[%c6_71] : memref<16xf32, #tpu.memory_space<smem>>
    %229 = vector.broadcast %228 : f32 to vector<2x128xf32>
    %230 = arith.mulf %229, %34 : vector<2x128xf32>
    %231 = arith.addf %227, %230 : vector<2x128xf32>
    %c7_72 = arith.constant 7 : index
    %232 = memref.load %arg8[%c7_72] : memref<16xf32, #tpu.memory_space<smem>>
    %233 = vector.broadcast %232 : f32 to vector<2x128xf32>
    %234 = arith.mulf %233, %35 : vector<2x128xf32>
    %235 = arith.addf %231, %234 : vector<2x128xf32>
    %c2_73 = arith.constant 2 : index
    %236 = memref.load %arg9[%c2_73] : memref<4xf32, #tpu.memory_space<smem>>
    %c8_74 = arith.constant 8 : index
    %237 = memref.load %arg8[%c8_74] : memref<16xf32, #tpu.memory_space<smem>>
    %238 = vector.broadcast %237 : f32 to vector<2x128xf32>
    %239 = arith.mulf %238, %32 : vector<2x128xf32>
    %240 = vector.broadcast %236 : f32 to vector<2x128xf32>
    %241 = arith.addf %240, %239 : vector<2x128xf32>
    %c9_75 = arith.constant 9 : index
    %242 = memref.load %arg8[%c9_75] : memref<16xf32, #tpu.memory_space<smem>>
    %243 = vector.broadcast %242 : f32 to vector<2x128xf32>
    %244 = arith.mulf %243, %33 : vector<2x128xf32>
    %245 = arith.addf %241, %244 : vector<2x128xf32>
    %c10_76 = arith.constant 10 : index
    %246 = memref.load %arg8[%c10_76] : memref<16xf32, #tpu.memory_space<smem>>
    %247 = vector.broadcast %246 : f32 to vector<2x128xf32>
    %248 = arith.mulf %247, %34 : vector<2x128xf32>
    %249 = arith.addf %245, %248 : vector<2x128xf32>
    %c11_77 = arith.constant 11 : index
    %250 = memref.load %arg8[%c11_77] : memref<16xf32, #tpu.memory_space<smem>>
    %251 = vector.broadcast %250 : f32 to vector<2x128xf32>
    %252 = arith.mulf %251, %35 : vector<2x128xf32>
    %253 = arith.addf %249, %252 : vector<2x128xf32>
    %c3_78 = arith.constant 3 : index
    %254 = memref.load %arg9[%c3_78] : memref<4xf32, #tpu.memory_space<smem>>
    %c12_79 = arith.constant 12 : index
    %255 = memref.load %arg8[%c12_79] : memref<16xf32, #tpu.memory_space<smem>>
    %256 = vector.broadcast %255 : f32 to vector<2x128xf32>
    %257 = arith.mulf %256, %32 : vector<2x128xf32>
    %258 = vector.broadcast %254 : f32 to vector<2x128xf32>
    %259 = arith.addf %258, %257 : vector<2x128xf32>
    %c13_80 = arith.constant 13 : index
    %260 = memref.load %arg8[%c13_80] : memref<16xf32, #tpu.memory_space<smem>>
    %261 = vector.broadcast %260 : f32 to vector<2x128xf32>
    %262 = arith.mulf %261, %33 : vector<2x128xf32>
    %263 = arith.addf %259, %262 : vector<2x128xf32>
    %c14_81 = arith.constant 14 : index
    %264 = memref.load %arg8[%c14_81] : memref<16xf32, #tpu.memory_space<smem>>
    %265 = vector.broadcast %264 : f32 to vector<2x128xf32>
    %266 = arith.mulf %265, %34 : vector<2x128xf32>
    %267 = arith.addf %263, %266 : vector<2x128xf32>
    %c15_82 = arith.constant 15 : index
    %268 = memref.load %arg8[%c15_82] : memref<16xf32, #tpu.memory_space<smem>>
    %269 = vector.broadcast %268 : f32 to vector<2x128xf32>
    %270 = arith.mulf %269, %35 : vector<2x128xf32>
    %271 = arith.addf %267, %270 : vector<2x128xf32>
    %cst_83 = arith.constant 0.000000e+00 : f32
    %272 = vector.broadcast %cst_83 : f32 to vector<2x128xf32>
    %273 = arith.cmpf oge, %217, %272 : vector<2x128xf32>
    %cst_84 = arith.constant 1.000000e-01 : f32
    %274 = vector.broadcast %cst_84 : f32 to vector<2x128xf32>
    %275 = arith.mulf %274, %217 : vector<2x128xf32>
    %276 = arith.select %273, %217, %275 : vector<2x128xi1>, vector<2x128xf32>
    %cst_85 = arith.constant 0.000000e+00 : f32
    %277 = vector.broadcast %cst_85 : f32 to vector<2x128xf32>
    %278 = arith.cmpf oge, %235, %277 : vector<2x128xf32>
    %cst_86 = arith.constant 1.000000e-01 : f32
    %279 = vector.broadcast %cst_86 : f32 to vector<2x128xf32>
    %280 = arith.mulf %279, %235 : vector<2x128xf32>
    %281 = arith.select %278, %235, %280 : vector<2x128xi1>, vector<2x128xf32>
    %cst_87 = arith.constant 0.000000e+00 : f32
    %282 = vector.broadcast %cst_87 : f32 to vector<2x128xf32>
    %283 = arith.cmpf oge, %253, %282 : vector<2x128xf32>
    %cst_88 = arith.constant 1.000000e-01 : f32
    %284 = vector.broadcast %cst_88 : f32 to vector<2x128xf32>
    %285 = arith.mulf %284, %253 : vector<2x128xf32>
    %286 = arith.select %283, %253, %285 : vector<2x128xi1>, vector<2x128xf32>
    %cst_89 = arith.constant 0.000000e+00 : f32
    %287 = vector.broadcast %cst_89 : f32 to vector<2x128xf32>
    %288 = arith.cmpf oge, %271, %287 : vector<2x128xf32>
    %cst_90 = arith.constant 1.000000e-01 : f32
    %289 = vector.broadcast %cst_90 : f32 to vector<2x128xf32>
    %290 = arith.mulf %289, %271 : vector<2x128xf32>
    %291 = arith.select %288, %271, %290 : vector<2x128xi1>, vector<2x128xf32>
    %c0_91 = arith.constant 0 : index
    %292 = memref.load %arg11[%c0_91] : memref<4xf32, #tpu.memory_space<smem>>
    %c0_92 = arith.constant 0 : index
    %293 = memref.load %arg10[%c0_92] : memref<16xf32, #tpu.memory_space<smem>>
    %294 = vector.broadcast %293 : f32 to vector<2x128xf32>
    %295 = arith.mulf %294, %276 : vector<2x128xf32>
    %296 = vector.broadcast %292 : f32 to vector<2x128xf32>
    %297 = arith.addf %296, %295 : vector<2x128xf32>
    %c1_93 = arith.constant 1 : index
    %298 = memref.load %arg10[%c1_93] : memref<16xf32, #tpu.memory_space<smem>>
    %299 = vector.broadcast %298 : f32 to vector<2x128xf32>
    %300 = arith.mulf %299, %281 : vector<2x128xf32>
    %301 = arith.addf %297, %300 : vector<2x128xf32>
    %c2_94 = arith.constant 2 : index
    %302 = memref.load %arg10[%c2_94] : memref<16xf32, #tpu.memory_space<smem>>
    %303 = vector.broadcast %302 : f32 to vector<2x128xf32>
    %304 = arith.mulf %303, %286 : vector<2x128xf32>
    %305 = arith.addf %301, %304 : vector<2x128xf32>
    %c3_95 = arith.constant 3 : index
    %306 = memref.load %arg10[%c3_95] : memref<16xf32, #tpu.memory_space<smem>>
    %307 = vector.broadcast %306 : f32 to vector<2x128xf32>
    %308 = arith.mulf %307, %291 : vector<2x128xf32>
    %309 = arith.addf %305, %308 : vector<2x128xf32>
    %c1_96 = arith.constant 1 : index
    %310 = memref.load %arg11[%c1_96] : memref<4xf32, #tpu.memory_space<smem>>
    %c4_97 = arith.constant 4 : index
    %311 = memref.load %arg10[%c4_97] : memref<16xf32, #tpu.memory_space<smem>>
    %312 = vector.broadcast %311 : f32 to vector<2x128xf32>
    %313 = arith.mulf %312, %276 : vector<2x128xf32>
    %314 = vector.broadcast %310 : f32 to vector<2x128xf32>
    %315 = arith.addf %314, %313 : vector<2x128xf32>
    %c5_98 = arith.constant 5 : index
    %316 = memref.load %arg10[%c5_98] : memref<16xf32, #tpu.memory_space<smem>>
    %317 = vector.broadcast %316 : f32 to vector<2x128xf32>
    %318 = arith.mulf %317, %281 : vector<2x128xf32>
    %319 = arith.addf %315, %318 : vector<2x128xf32>
    %c6_99 = arith.constant 6 : index
    %320 = memref.load %arg10[%c6_99] : memref<16xf32, #tpu.memory_space<smem>>
    %321 = vector.broadcast %320 : f32 to vector<2x128xf32>
    %322 = arith.mulf %321, %286 : vector<2x128xf32>
    %323 = arith.addf %319, %322 : vector<2x128xf32>
    %c7_100 = arith.constant 7 : index
    %324 = memref.load %arg10[%c7_100] : memref<16xf32, #tpu.memory_space<smem>>
    %325 = vector.broadcast %324 : f32 to vector<2x128xf32>
    %326 = arith.mulf %325, %291 : vector<2x128xf32>
    %327 = arith.addf %323, %326 : vector<2x128xf32>
    %c2_101 = arith.constant 2 : index
    %328 = memref.load %arg11[%c2_101] : memref<4xf32, #tpu.memory_space<smem>>
    %c8_102 = arith.constant 8 : index
    %329 = memref.load %arg10[%c8_102] : memref<16xf32, #tpu.memory_space<smem>>
    %330 = vector.broadcast %329 : f32 to vector<2x128xf32>
    %331 = arith.mulf %330, %276 : vector<2x128xf32>
    %332 = vector.broadcast %328 : f32 to vector<2x128xf32>
    %333 = arith.addf %332, %331 : vector<2x128xf32>
    %c9_103 = arith.constant 9 : index
    %334 = memref.load %arg10[%c9_103] : memref<16xf32, #tpu.memory_space<smem>>
    %335 = vector.broadcast %334 : f32 to vector<2x128xf32>
    %336 = arith.mulf %335, %281 : vector<2x128xf32>
    %337 = arith.addf %333, %336 : vector<2x128xf32>
    %c10_104 = arith.constant 10 : index
    %338 = memref.load %arg10[%c10_104] : memref<16xf32, #tpu.memory_space<smem>>
    %339 = vector.broadcast %338 : f32 to vector<2x128xf32>
    %340 = arith.mulf %339, %286 : vector<2x128xf32>
    %341 = arith.addf %337, %340 : vector<2x128xf32>
    %c11_105 = arith.constant 11 : index
    %342 = memref.load %arg10[%c11_105] : memref<16xf32, #tpu.memory_space<smem>>
    %343 = vector.broadcast %342 : f32 to vector<2x128xf32>
    %344 = arith.mulf %343, %291 : vector<2x128xf32>
    %345 = arith.addf %341, %344 : vector<2x128xf32>
    %c3_106 = arith.constant 3 : index
    %346 = memref.load %arg11[%c3_106] : memref<4xf32, #tpu.memory_space<smem>>
    %c12_107 = arith.constant 12 : index
    %347 = memref.load %arg10[%c12_107] : memref<16xf32, #tpu.memory_space<smem>>
    %348 = vector.broadcast %347 : f32 to vector<2x128xf32>
    %349 = arith.mulf %348, %276 : vector<2x128xf32>
    %350 = vector.broadcast %346 : f32 to vector<2x128xf32>
    %351 = arith.addf %350, %349 : vector<2x128xf32>
    %c13_108 = arith.constant 13 : index
    %352 = memref.load %arg10[%c13_108] : memref<16xf32, #tpu.memory_space<smem>>
    %353 = vector.broadcast %352 : f32 to vector<2x128xf32>
    %354 = arith.mulf %353, %281 : vector<2x128xf32>
    %355 = arith.addf %351, %354 : vector<2x128xf32>
    %c14_109 = arith.constant 14 : index
    %356 = memref.load %arg10[%c14_109] : memref<16xf32, #tpu.memory_space<smem>>
    %357 = vector.broadcast %356 : f32 to vector<2x128xf32>
    %358 = arith.mulf %357, %286 : vector<2x128xf32>
    %359 = arith.addf %355, %358 : vector<2x128xf32>
    %c15_110 = arith.constant 15 : index
    %360 = memref.load %arg10[%c15_110] : memref<16xf32, #tpu.memory_space<smem>>
    %361 = vector.broadcast %360 : f32 to vector<2x128xf32>
    %362 = arith.mulf %361, %291 : vector<2x128xf32>
    %363 = arith.addf %359, %362 : vector<2x128xf32>
    %364 = math.cos %309 : vector<2x128xf32>
    %365 = arith.mulf %145, %364 : vector<2x128xf32>
    %c0_111 = arith.constant 0 : index
    %c0_112 = arith.constant 0 : index
    %c0_113 = arith.constant 0 : index
    %c0_114 = arith.constant 0 : index
    %366 = vector.load %arg12[%c0_111, %c0_112, %c0_113, %c0_114] : memref<1x4x2x128xf32, #tpu.memory_space<vmem>>, vector<1x1x2x128xf32>
    %367 = vector.shape_cast %366 : vector<1x1x2x128xf32> to vector<2x128xf32>
    %368 = vector.shape_cast %365 : vector<2x128xf32> to vector<1x1x2x128xf32>
    tpu.vector_store %arg12[%c0_111, %c0_112, %c0_113, %c0_114], %368 {strides = array<i32>} : memref<1x4x2x128xf32, #tpu.memory_space<vmem>>, vector<1x1x2x128xf32>,
    %369 = math.sin %309 : vector<2x128xf32>
    %370 = arith.mulf %145, %369 : vector<2x128xf32>
    %c0_115 = arith.constant 0 : index
    %c0_116 = arith.constant 0 : index
    %c0_117 = arith.constant 0 : index
    %c0_118 = arith.constant 0 : index
    %371 = vector.load %arg13[%c0_115, %c0_116, %c0_117, %c0_118] : memref<1x4x2x128xf32, #tpu.memory_space<vmem>>, vector<1x1x2x128xf32>
    %372 = vector.shape_cast %371 : vector<1x1x2x128xf32> to vector<2x128xf32>
    %373 = vector.shape_cast %370 : vector<2x128xf32> to vector<1x1x2x128xf32>
    tpu.vector_store %arg13[%c0_115, %c0_116, %c0_117, %c0_118], %373 {strides = array<i32>} : memref<1x4x2x128xf32, #tpu.memory_space<vmem>>, vector<1x1x2x128xf32>,
    %374 = math.cos %327 : vector<2x128xf32>
    %375 = arith.mulf %163, %374 : vector<2x128xf32>
    %c0_119 = arith.constant 0 : index
    %c1_120 = arith.constant 1 : index
    %c0_121 = arith.constant 0 : index
    %c0_122 = arith.constant 0 : index
    %376 = vector.load %arg12[%c0_119, %c1_120, %c0_121, %c0_122] : memref<1x4x2x128xf32, #tpu.memory_space<vmem>>, vector<1x1x2x128xf32>
    %377 = vector.shape_cast %376 : vector<1x1x2x128xf32> to vector<2x128xf32>
    %378 = vector.shape_cast %375 : vector<2x128xf32> to vector<1x1x2x128xf32>
    tpu.vector_store %arg12[%c0_119, %c1_120, %c0_121, %c0_122], %378 {strides = array<i32>} : memref<1x4x2x128xf32, #tpu.memory_space<vmem>>, vector<1x1x2x128xf32>,
    %379 = math.sin %327 : vector<2x128xf32>
    %380 = arith.mulf %163, %379 : vector<2x128xf32>
    %c0_123 = arith.constant 0 : index
    %c1_124 = arith.constant 1 : index
    %c0_125 = arith.constant 0 : index
    %c0_126 = arith.constant 0 : index
    %381 = vector.load %arg13[%c0_123, %c1_124, %c0_125, %c0_126] : memref<1x4x2x128xf32, #tpu.memory_space<vmem>>, vector<1x1x2x128xf32>
    %382 = vector.shape_cast %381 : vector<1x1x2x128xf32> to vector<2x128xf32>
    %383 = vector.shape_cast %380 : vector<2x128xf32> to vector<1x1x2x128xf32>
    tpu.vector_store %arg13[%c0_123, %c1_124, %c0_125, %c0_126], %383 {strides = array<i32>} : memref<1x4x2x128xf32, #tpu.memory_space<vmem>>, vector<1x1x2x128xf32>,
    %384 = math.cos %345 : vector<2x128xf32>
    %385 = arith.mulf %181, %384 : vector<2x128xf32>
    %c0_127 = arith.constant 0 : index
    %c2_128 = arith.constant 2 : index
    %c0_129 = arith.constant 0 : index
    %c0_130 = arith.constant 0 : index
    %386 = vector.load %arg12[%c0_127, %c2_128, %c0_129, %c0_130] : memref<1x4x2x128xf32, #tpu.memory_space<vmem>>, vector<1x1x2x128xf32>
    %387 = vector.shape_cast %386 : vector<1x1x2x128xf32> to vector<2x128xf32>
    %388 = vector.shape_cast %385 : vector<2x128xf32> to vector<1x1x2x128xf32>
    tpu.vector_store %arg12[%c0_127, %c2_128, %c0_129, %c0_130], %388 {strides = array<i32>} : memref<1x4x2x128xf32, #tpu.memory_space<vmem>>, vector<1x1x2x128xf32>,
    %389 = math.sin %345 : vector<2x128xf32>
    %390 = arith.mulf %181, %389 : vector<2x128xf32>
    %c0_131 = arith.constant 0 : index
    %c2_132 = arith.constant 2 : index
    %c0_133 = arith.constant 0 : index
    %c0_134 = arith.constant 0 : index
    %391 = vector.load %arg13[%c0_131, %c2_132, %c0_133, %c0_134] : memref<1x4x2x128xf32, #tpu.memory_space<vmem>>, vector<1x1x2x128xf32>
    %392 = vector.shape_cast %391 : vector<1x1x2x128xf32> to vector<2x128xf32>
    %393 = vector.shape_cast %390 : vector<2x128xf32> to vector<1x1x2x128xf32>
    tpu.vector_store %arg13[%c0_131, %c2_132, %c0_133, %c0_134], %393 {strides = array<i32>} : memref<1x4x2x128xf32, #tpu.memory_space<vmem>>, vector<1x1x2x128xf32>,
    %394 = math.cos %363 : vector<2x128xf32>
    %395 = arith.mulf %199, %394 : vector<2x128xf32>
    %c0_135 = arith.constant 0 : index
    %c3_136 = arith.constant 3 : index
    %c0_137 = arith.constant 0 : index
    %c0_138 = arith.constant 0 : index
    %396 = vector.load %arg12[%c0_135, %c3_136, %c0_137, %c0_138] : memref<1x4x2x128xf32, #tpu.memory_space<vmem>>, vector<1x1x2x128xf32>
    %397 = vector.shape_cast %396 : vector<1x1x2x128xf32> to vector<2x128xf32>
    %398 = vector.shape_cast %395 : vector<2x128xf32> to vector<1x1x2x128xf32>
    tpu.vector_store %arg12[%c0_135, %c3_136, %c0_137, %c0_138], %398 {strides = array<i32>} : memref<1x4x2x128xf32, #tpu.memory_space<vmem>>, vector<1x1x2x128xf32>,
    %399 = math.sin %363 : vector<2x128xf32>
    %400 = arith.mulf %199, %399 : vector<2x128xf32>
    %c0_139 = arith.constant 0 : index
    %c3_140 = arith.constant 3 : index
    %c0_141 = arith.constant 0 : index
    %c0_142 = arith.constant 0 : index
    %401 = vector.load %arg13[%c0_139, %c3_140, %c0_141, %c0_142] : memref<1x4x2x128xf32, #tpu.memory_space<vmem>>, vector<1x1x2x128xf32>
    %402 = vector.shape_cast %401 : vector<1x1x2x128xf32> to vector<2x128xf32>
    %403 = vector.shape_cast %400 : vector<2x128xf32> to vector<1x1x2x128xf32>
    tpu.vector_store %arg13[%c0_139, %c3_140, %c0_141, %c0_142], %403 {strides = array<i32>} : memref<1x4x2x128xf32, #tpu.memory_space<vmem>>, vector<1x1x2x128xf32>,
    return
  }
  func.func @transform_0(%arg0: i32, %arg1: i32) -> (i32, i32, i32, i32) {
    %c0_i32 = arith.constant 0 : i32
    %c0_i32_0 = arith.constant 0 : i32
    %c0_i32_1 = arith.constant 0 : i32
    return %arg0, %c0_i32, %arg1, %c0_i32_0 : i32, i32, i32, i32
  }
  func.func @transform_1(%arg0: i32, %arg1: i32) -> (i32, i32, i32, i32) {
    %c0_i32 = arith.constant 0 : i32
    %c0_i32_0 = arith.constant 0 : i32
    %c0_i32_1 = arith.constant 0 : i32
    return %arg0, %c0_i32, %arg1, %c0_i32_0 : i32, i32, i32, i32
  }
  func.func @transform_2(%arg0: i32, %arg1: i32) -> i32 {
    %c0_i32 = arith.constant 0 : i32
    %c0_i32_0 = arith.constant 0 : i32
    return %c0_i32 : i32
  }
  func.func @transform_3(%arg0: i32, %arg1: i32) -> i32 {
    %c0_i32 = arith.constant 0 : i32
    %c0_i32_0 = arith.constant 0 : i32
    return %c0_i32 : i32
  }
  func.func @transform_4(%arg0: i32, %arg1: i32) -> i32 {
    %c0_i32 = arith.constant 0 : i32
    %c0_i32_0 = arith.constant 0 : i32
    return %c0_i32 : i32
  }
  func.func @transform_5(%arg0: i32, %arg1: i32) -> i32 {
    %c0_i32 = arith.constant 0 : i32
    %c0_i32_0 = arith.constant 0 : i32
    return %c0_i32 : i32
  }
  func.func @transform_6(%arg0: i32, %arg1: i32) -> i32 {
    %c0_i32 = arith.constant 0 : i32
    %c0_i32_0 = arith.constant 0 : i32
    return %c0_i32 : i32
  }
  func.func @transform_7(%arg0: i32, %arg1: i32) -> i32 {
    %c0_i32 = arith.constant 0 : i32
    %c0_i32_0 = arith.constant 0 : i32
    return %c0_i32 : i32
  }
  func.func @transform_8(%arg0: i32, %arg1: i32) -> i32 {
    %c0_i32 = arith.constant 0 : i32
    %c0_i32_0 = arith.constant 0 : i32
    return %c0_i32 : i32
  }
  func.func @transform_9(%arg0: i32, %arg1: i32) -> i32 {
    %c0_i32 = arith.constant 0 : i32
    %c0_i32_0 = arith.constant 0 : i32
    return %c0_i32 : i32
  }
  func.func @transform_10(%arg0: i32, %arg1: i32) -> (i32, i32, i32, i32) {
    %c0_i32 = arith.constant 0 : i32
    %c0_i32_0 = arith.constant 0 : i32
    %c0_i32_1 = arith.constant 0 : i32
    return %arg0, %c0_i32, %arg1, %c0_i32_0 : i32, i32, i32, i32
  }
  func.func @transform_11(%arg0: i32, %arg1: i32) -> (i32, i32, i32, i32) {
    %c0_i32 = arith.constant 0 : i32
    %c0_i32_0 = arith.constant 0 : i32
    %c0_i32_1 = arith.constant 0 : i32
    return %arg0, %c0_i32, %arg1, %c0_i32_0 : i32, i32, i32, i32
  }
}

</mosaic_0001>

<bundles_post_ra>
// kernel: custom-call.1
= control target key start
LH: loop header
LB: loop body
LE: loop exit
PB: predicated region body
PF: predicated region fallthrough
CT: control target
= control target key end

     0   :  { %s59_s0 = inlined_call_operand.hbm [shape: c64[2,4,16,16], index: 0, kind: input, shape index: {}]   ;;  %s60_s1 = inlined_call_operand.vmem [shape: f32[2,4,16,16], index: 1, kind: output, shape index: {}]  }
   0x1   :  { %s2_s8 = scalar_lea.hbm %s59_s0, 2048 }
   0x2   :  { %3 = vsyncpa [#allocation0], 0  ;;  %s4_s11 = sshll.u32 %s60_s1, 4  ;;  %s34_s14 = scalar_lea.hbm %s59_s0, 4096  ;;  %s5_s11 = int_to_ptr.vmem [resolvable:$true] %s4_s11 }
   0x3   :  { %p11_p0 = scmp.ne.s32.totalorder %s2_s8, %s34_s14  ;;  %p13_p1 = scmp.lt.u32.totalorder %s2_s8, %s59_s0 }
   0x4   :  { %p14_p2 = scmp.lt.u32.totalorder %s34_s14, %s34_s14  ;;  %p16_p4 = scmp.lt.u32.totalorder %s34_s14, %s2_s8 }
   0x6   :  { %p15_p3 = por %p14_p2, %p13_p1 }
   0x8   :  { %p17_p5 = por %p16_p4, %p15_p3 }
   0xa   :  { %p18_p6 = pnand %p17_p5, %p11_p0 }
   0xc   :  { %21 = shalt.err (!%p18_p6)  }
   0xd   :  { %s22_s17 = scalar_lea.vmem %s5_s11, 2048  ;;  %p27_p8 = scmp.lt.s32.totalorder %s5_s11, %s5_s11 }
   0xe   :  { %p23_p7 = scmp.ne.s32.totalorder %s5_s11, %s22_s17  ;;  %p28_p9 = scmp.lt.s32.totalorder %s22_s17, %s22_s17 }
  0x10   :  { %p29_p10 = por %p28_p9, %p27_p8 }
  0x12   :  { %p30_p11 = pnand %p29_p10, %p23_p7 }
  0x14   :  { %33 = shalt.err (!%p30_p11)  }
  0x15   :  { %7 = dma.hbm_to_vmem [thread:$0]  %s2_s8, 2048, %s5_s11, [#allocation0] }
  0x16   :  { %35 = dma.done.wait [#allocation0], 2048  }
  0x17   :  { %36 = vsyncadd [#allocation0], 4294965248 }
  0x18   :  { %9 = vsyncpa [#allocation0], 1 }

// kernel: custom-call
= control target key start
LH: loop header
LB: loop body
LE: loop exit
PB: predicated region body
PF: predicated region fallthrough
CT: control target
= control target key end

     0   :  { %2 = vsyncpa [#allocation0], 0  ;;  %s61_s0 = inlined_call_operand.hbm [shape: c64[2,4,16,16], index: 0, kind: input, shape index: {}]   ;;  %s62_s1 = inlined_call_operand.vmem [shape: f32[2,4,16,16], index: 1, kind: output, shape index: {}]  }
   0x1   :  { %s3_s8 = sshll.u32 %s62_s1, 4  ;;  %s9_s11 = scalar_lea.hbm %s61_s0, 2048  ;;  %s4_s8 = int_to_ptr.vmem [resolvable:$true] %s3_s8 }
   0x2   :  { %p10_p0 = scmp.ne.s32.totalorder %s61_s0, %s9_s11  ;;  %s11_s16 = scalar_lea.hbm %s61_s0, 4096 }
   0x3   :  { %p12_p1 = scmp.lt.u32.totalorder %s11_s16, %s9_s11  ;;  %p13_p2 = scmp.lt.u32.totalorder %s9_s11, %s61_s0 }
   0x5   :  { %p14_p3 = por %p13_p2, %p12_p1 }
   0x7   :  { %p15_p4 = pnand %p14_p3, %p10_p0 }
   0x9   :  { %18 = shalt.err (!%p15_p4)  }
   0xa   :  { %s19_s1 = scalar_lea.vmem %s4_s8, 2048  ;;  %p24_p6 = scmp.lt.s32.totalorder %s4_s8, %s4_s8 }
   0xb   :  { %p20_p5 = scmp.ne.s32.totalorder %s4_s8, %s19_s1  ;;  %p25_p7 = scmp.lt.s32.totalorder %s19_s1, %s19_s1 }
   0xd   :  { %p26_p8 = por %p25_p7, %p24_p6 }
   0xf   :  { %p27_p9 = pnand %p26_p8, %p20_p5 }
  0x11   :  { %30 = shalt.err (!%p27_p9)  }
  0x12   :  { %6 = dma.hbm_to_vmem [thread:$0]  %s61_s0, 2048, %s4_s8, [#allocation0] }
  0x13   :  { %31 = dma.done.wait [#allocation0], 2048  }
  0x14   :  { %32 = vsyncadd [#allocation0], 4294965248 }
  0x15   :  { %8 = vsyncpa [#allocation0], 1 }

// kernel: custom-call.2
= control target key start
LH: loop header
LB: loop body
LE: loop exit
PB: predicated region body
PF: predicated region fallthrough
CT: control target
= control target key end

     0   :  { %s126_s0 = inlined_call_operand.vmem [shape: f32[2,4,16,16], index: 0, kind: input, shape index: {}]   ;;  %s127_s1 = inlined_call_operand.vmem [shape: f32[2,4,16,16], index: 1, kind: input, shape index: {}]   ;;  %s128_s2 = inlined_call_operand.hbm [shape: c64[2,4,16,16], index: 2, kind: output, shape index: {}]  }
   0x1   :  { %s87_s11 = scalar_lea.hbm %s128_s2, 2048 }
   0x2   :  { %4 = vsyncpa [#allocation0], 0  ;;  %s5_s14 = sshll.u32 %s126_s0, 4  ;;  %s6_s14 = int_to_ptr.vmem [resolvable:$true] %s5_s14 }
   0x3   :  { %s18_s15 = scalar_lea.vmem %s6_s14, 2048  ;;  %p23_p1 = scmp.lt.s32.totalorder %s6_s14, %s6_s14 }
   0x4   :  { %p19_p0 = scmp.ne.s32.totalorder %s6_s14, %s18_s15  ;;  %p24_p2 = scmp.lt.s32.totalorder %s18_s15, %s18_s15 }
   0x6   :  { %p25_p3 = por %p24_p2, %p23_p1 }
   0x8   :  { %p26_p4 = pnand %p25_p3, %p19_p0 }
   0xa   :  { %29 = shalt.err (!%p26_p4)  }
   0xb   :  { %p31_p5 = scmp.ne.s32.totalorder %s128_s2, %s87_s11  ;;  %s32_s0 = scalar_lea.hbm %s128_s2, 4096 }
   0xc   :  { %p33_p6 = scmp.lt.u32.totalorder %s32_s0, %s87_s11  ;;  %p34_p7 = scmp.lt.u32.totalorder %s87_s11, %s128_s2 }
   0xe   :  { %p35_p8 = por %p34_p7, %p33_p6 }
  0x10   :  { %p36_p9 = pnand %p35_p8, %p31_p5 }
  0x12   :  { %39 = shalt.err (!%p36_p9)  }
  0x13   :  { %8 = dma.vmem_to_hbm [thread:$0]  %s6_s14, 2048, %s128_s2, [#allocation0] }
  0x14   :  { %65 = dma.done.wait [#allocation0], 2048  }
  0x15   :  { %66 = vsyncadd [#allocation0], 4294965248 }
  0x16   :  { %10 = vsyncpa [#allocation0], 1 }
  0x17   :  { %11 = vsyncpa [#allocation1], 0  ;;  %s12_s28 = sshll.u32 %s127_s1, 4  ;;  %s13_s28 = int_to_ptr.vmem [resolvable:$true] %s12_s28 }
  0x18   :  { %s40_s29 = scalar_lea.vmem %s13_s28, 2048  ;;  %p45_p11 = scmp.lt.s32.totalorder %s13_s28, %s13_s28 }
  0x19   :  { %p41_p10 = scmp.ne.s32.totalorder %s13_s28, %s40_s29  ;;  %p46_p12 = scmp.lt.s32.totalorder %s40_s29, %s40_s29 }
  0x1b   :  { %p47_p13 = por %p46_p12, %p45_p11 }
  0x1d   :  { %p48_p0 = pnand %p47_p13, %p41_p10 }
  0x1f   :  { %51 = shalt.err (!%p48_p0)  }
  0x20   :  { %p53_p1 = scmp.ne.s32.totalorder %s87_s11, %s32_s0  ;;  %p56_p2 = scmp.lt.u32.totalorder %s32_s0, %s32_s0 }
  0x22   :  { %p57_p3 = por %p56_p2, %p34_p7 }
  0x24   :  { %p59_p4 = por %p57_p3, %p33_p6 }
  0x26   :  { %p60_p5 = pnand %p59_p4, %p53_p1 }
  0x28   :  { %63 = shalt.err (!%p60_p5)  }
  0x29   :  { %15 = dma.vmem_to_hbm [thread:$0]  %s13_s28, 2048, %s87_s11, [#allocation1] }
  0x2a   :  { %67 = dma.done.wait [#allocation1], 2048  }
  0x2b   :  { %68 = vsyncadd [#allocation1], 4294965248 }
  0x2c   :  { %17 = vsyncpa [#allocation1], 1 }

// kernel: freblock_forward.1
= control target key start
LH: loop header
LB: loop body
LE: loop exit
PB: predicated region body
PF: predicated region fallthrough
CT: control target
= control target key end

     0   :  { %s3938_s0 = inlined_call_operand.vmem [shape: f32[2,4,2,128], index: 0, kind: input, shape index: {}]   ;;  %s3939_s1 = inlined_call_operand.vmem [shape: f32[2,4,2,128], index: 1, kind: input, shape index: {}]   ;;  %s3940_s2 = inlined_call_operand.vmem [shape: f32[16], index: 2, kind: input, shape index: {}]   ;;  %s3941_s3 = inlined_call_operand.vmem [shape: f32[4], index: 3, kind: input, shape index: {}]   ;;  %s3942_s4 = inlined_call_operand.vmem [shape: f32[16], index: 4, kind: input, shape index: {}]   ;;  %s3943_s5 = inlined_call_operand.vmem [shape: f32[4], index: 5, kind: input, shape index: {}]   ;;  %s3944_s6 = inlined_call_operand.vmem [shape: f32[16], index: 6, kind: input, shape index: {}]   ;;  %s3945_s7 = inlined_call_operand.vmem [shape: f32[4], index: 7, kind: input, shape index: {}]   ;;  %s3946_s8 = inlined_call_operand.vmem [shape: f32[16], index: 8, kind: input, shape index: {}]   ;;  %s3947_s9 = inlined_call_operand.vmem [shape: f32[4], index: 9, kind: input, shape index: {}]   ;;  %s3948_s10 = inlined_call_operand.vmem [shape: f32[2,4,2,128], index: 10, kind: output, shape index: {0}]   ;;  %s3949_s11 = inlined_call_operand.vmem [shape: f32[2,4,2,128], index: 11, kind: output, shape index: {1}]  }
   0x1   :  { %3955 = sst [smem:[#allocation20_spill]] %s3938_s0 }
   0x2   :  { %17 = vsyncpa [#allocation3], 0 }
   0x3   :  { %18 = vsyncpa [#allocation5], 0 }
   0x4   :  { %19 = vsyncpa [#allocation8], 0 }
   0x5   :  { %20 = vsyncpa [#allocation11], 0 }
   0x6   :  { %21 = vsyncpa [#allocation14], 0  ;;  %s2756_s17 = smov 0   ;;  %s2758_s18 = smov 0  }
   0x7   :  { %s2760_s19 = smov 0  }
   0x8 LB: > { %s348_s22 = sshll.u32 %s3941_s3, 4  ;;  %s2204_s23 = sadd.s32 4294967295, %s2678_s19   ;;  %s2678_s19 = sphi %s2760_s19, %s27_s19   ;;  %s2674_s18 = sphi %s2758_s18, %s3987_s18   ;;  %s2670_s17 = sphi %s2756_s17, %s3986_s17   ;;  %s349_s22 = int_to_ptr.vmem [resolvable:$true] %s348_s22 }
   0x9   : > { %p2206_p0 = scmp.ge.s32.totalorder %s2678_s19, 1  ;;  %p324_p1 = scmp.lt.s32.totalorder %s2678_s19, 3 }
   0xa   : > { %p2777_p2 = scmp.eq.s32.totalorder %s2204_s23, 0  ;;  %s370_s28 = sshll.u32 %s3943_s5, 4  ;;  %s371_s28 = int_to_ptr.vmem [resolvable:$true] %s370_s28 }
   0xb   : > { %p2781_p3 = pnand %p2206_p0, %p324_p1  ;;  %s392_s12 = sshll.u32 %s3945_s7, 4  ;;  %s2793_s12 = int_to_ptr.vmem [resolvable:$true] %s392_s12 }
   0xc   : > { %s3956_s24 = scalar_select %p2777_p2, 1, 0 }
   0xd   : > { %s3957_s25 = scalar_select %p2781_p3, 1, 0 }
   0xe   : > { %p2403_p4 = pneg %p2781_p3  ;;  %s2516_s14 = scalar_lea.vmem %s349_s22, 16 }
   0xf   : > { %p2517_p6 = scmp.ne.s32.totalorder %s349_s22, %s2516_s14  ;;  %p2524_p10 = scmp.lt.s32.totalorder %s349_s22, %s349_s22 }
  0x10   : > { %p2797_p5 = pnand %p2777_p2, %p2403_p4  ;;  %p2525_p11 = scmp.lt.s32.totalorder %s2516_s14, %s2516_s14 }
  0x12   : > { %p2803_p7 = pneg %p2797_p5  ;;  %p2526_p12 = por %p2525_p11, %p2524_p10 }
  0x14   : > { %p2519_p8 = pnand %p2803_p7, %p2517_p6 }
  0x16   : > { %p2520_p9 = pneg %p2519_p8 }
  0x18   : > { %p2527_p13 = pnand %p2526_p12, %p2520_p9 }
  0x1a   : > { %2530 = shalt.err (!%p2527_p13)
}
  0x1b   : > { %s2680_s16 = smov [#allocation4]   ;;  %s2531_s20 = scalar_lea.vmem %s371_s28, 16 }
  0x1c   : > { %2409 = dma.vmem_to_smem (!%p2797_p5), %s349_s22, 16, %s2680_s16, [#allocation5]  }
  0x1d   : > { %p2532_p0 = scmp.ne.s32.totalorder %s371_s28, %s2531_s20  ;;  %p2539_p2 = scmp.lt.s32.totalorder %s371_s28, %s371_s28 }
  0x1e   : > { %p2540_p3 = scmp.lt.s32.totalorder %s2531_s20, %s2531_s20 }
  0x1f   : > { %p2534_p1 = pnand %p2532_p0, %p2803_p7 }
  0x20   : > { %p2541_p6 = por %p2540_p3, %p2539_p2 }
  0x21   : > { %p2535_p4 = pneg %p2534_p1 }
  0x23   : > { %p2542_p8 = pnand %p2541_p6, %p2535_p4 }
  0x25   : > { %2545 = shalt.err (!%p2542_p8)
}
  0x26   : > { %s2681_s21 = smov [#allocation7]   ;;  %s2546_s23 = scalar_lea.vmem %s2793_s12, 16 }
  0x27   : > { %2415 = dma.vmem_to_smem (!%p2797_p5), %s371_s28, 16, %s2681_s21, [#allocation8]  }
  0x28   : > { %p2547_p9 = scmp.ne.s32.totalorder %s2793_s12, %s2546_s23  ;;  %p2554_p12 = scmp.lt.s32.totalorder %s2793_s12, %s2793_s12 }
  0x29   : > { %p2555_p13 = scmp.lt.s32.totalorder %s2546_s23, %s2546_s23 }
  0x2a   : > { %p2549_p10 = pnand %p2547_p9, %p2803_p7 }
  0x2b   : > { %p2556_p0 = por %p2555_p13, %p2554_p12 }
  0x2c   : > { %p2550_p11 = pneg %p2549_p10 }
  0x2e   : > { %p2557_p2 = pnand %p2556_p0, %p2550_p11 }
  0x30   : > { %2560 = shalt.err (!%p2557_p2)
}
  0x31   : > { %s2682_s22 = smov [#allocation10]   ;;  %s39_s26 = sadd.s32 1, %s2674_s18 }
  0x32   : > { %2421 = dma.vmem_to_smem (!%p2797_p5), %s2793_s12, 16, %s2682_s22, [#allocation11]  }
  0x33   : > { %s337_s29 = sshll.u32 %s3940_s2, 4  ;;  %p41_p3 = scmp.ge.s32.totalorder %s39_s26, 2  ;;  %s338_s29 = int_to_ptr.vmem [resolvable:$true] %s337_s29 }
  0x34   : > { %s359_s16 = sshll.u32 %s3942_s4, 4  ;;  %s2561_s20 = scalar_lea.vmem %s338_s29, 16  ;;  %s360_s16 = int_to_ptr.vmem [resolvable:$true] %s359_s16 }
  0x35   : > { %s3989_s26 = smov (%p41_p3, %s39_s26), 0  ;;  %p2562_p1 = scmp.ne.s32.totalorder %s338_s29, %s2561_s20 }
  0x36   : > { %p2569_p8 = scmp.lt.s32.totalorder %s338_s29, %s338_s29  ;;  %p2570_p9 = scmp.lt.s32.totalorder %s2561_s20, %s2561_s20 }
  0x37   : > { %p2564_p4 = pnand %p2562_p1, %p2803_p7 }
  0x38   : > { %p2571_p10 = por %p2570_p9, %p2569_p8 }
  0x39   : > { %p2565_p6 = pneg %p2564_p4 }
  0x3b   : > { %p2572_p11 = pnand %p2571_p10, %p2565_p6 }
  0x3d   : > { %2575 = shalt.err (!%p2572_p11)
}
  0x3e   : > { %s2683_s12 = smov [#allocation2]   ;;  %s2576_s21 = scalar_lea.vmem %s360_s16, 16 }
  0x3f   : > { %2406 = dma.vmem_to_smem (!%p2797_p5), %s338_s29, 16, %s2683_s12, [#allocation3]  }
  0x40   : > { %p2577_p12 = scmp.ne.s32.totalorder %s360_s16, %s2576_s21  ;;  %p2584_p2 = scmp.lt.s32.totalorder %s360_s16, %s360_s16 }
  0x41   : > { %p2585_p3 = scmp.lt.s32.totalorder %s2576_s21, %s2576_s21 }
  0x42   : > { %p2579_p13 = pnand %p2577_p12, %p2803_p7 }
  0x43   : > { %p2586_p1 = por %p2585_p3, %p2584_p2 }
  0x44   : > { %p2580_p0 = pneg %p2579_p13 }
  0x46   : > { %p2587_p4 = pnand %p2586_p1, %p2580_p0 }
  0x48   : > { %2590 = shalt.err (!%p2587_p4)
}
  0x49   : > { %s2684_s23 = smov [#allocation6]   ;;  %s381_s28 = sshll.u32 %s3944_s6, 4  ;;  %s382_s28 = int_to_ptr.vmem [resolvable:$true] %s381_s28 }
  0x4a   : > { %2412 = dma.vmem_to_smem (!%p2797_p5), %s360_s16, 16, %s2684_s23, [#allocation5]  }
  0x4b   : > { %s403_s14 = sshll.u32 %s3946_s8, 4  ;;  %s2591_s20 = scalar_lea.vmem %s382_s28, 16  ;;  %s404_s14 = int_to_ptr.vmem [resolvable:$true] %s403_s14 }
  0x4c   : > { %p2592_p6 = scmp.ne.s32.totalorder %s382_s28, %s2591_s20  ;;  %p2599_p10 = scmp.lt.s32.totalorder %s382_s28, %s382_s28 }
  0x4d   : > { %p2600_p11 = scmp.lt.s32.totalorder %s2591_s20, %s2591_s20 }
  0x4e   : > { %p2594_p8 = pnand %p2592_p6, %p2803_p7 }
  0x4f   : > { %p2601_p12 = por %p2600_p11, %p2599_p10 }
  0x50   : > { %p2595_p9 = pneg %p2594_p8 }
  0x52   : > { %p2602_p13 = pnand %p2601_p12, %p2595_p9 }
  0x54   : > { %2605 = shalt.err (!%p2602_p13)
}
  0x55   : > { %s2685_s16 = smov [#allocation9]   ;;  %s2606_s12 = scalar_lea.vmem %s404_s14, 16 }
  0x56   : > { %2418 = dma.vmem_to_smem (!%p2797_p5), %s382_s28, 16, %s2685_s16, [#allocation8]  }
  0x57   : > { %p2607_p0 = scmp.ne.s32.totalorder %s404_s14, %s2606_s12  ;;  %p2614_p1 = scmp.lt.s32.totalorder %s404_s14, %s404_s14 }
  0x58   : > { %p2615_p4 = scmp.lt.s32.totalorder %s2606_s12, %s2606_s12 }
  0x59   : > { %p2609_p2 = pnand %p2607_p0, %p2803_p7 }
  0x5a   : > { %p2616_p6 = por %p2615_p4, %p2614_p1 }
  0x5b   : > { %p2610_p3 = pneg %p2609_p2 }
  0x5d   : > { %p2617_p8 = pnand %p2616_p6, %p2610_p3 }
  0x5f   : > { %2620 = shalt.err (!%p2617_p8)
}
  0x60   : > { %s2686_s21 = smov [#allocation12]   ;;  %s414_s27 = sshll.u32 %s3947_s9, 4  ;;  %s415_s27 = int_to_ptr.vmem [resolvable:$true] %s414_s27 }
  0x61   : > { %2424 = dma.vmem_to_smem (!%p2797_p5), %s404_s14, 16, %s2686_s21, [#allocation11]  }
  0x62   : > { %s2621_s28 = scalar_lea.vmem %s415_s27, 16  ;;  %p2629_p12 = scmp.lt.s32.totalorder %s415_s27, %s415_s27 }
  0x63   : > { %p2622_p9 = scmp.ne.s32.totalorder %s415_s27, %s2621_s28  ;;  %p2630_p13 = scmp.lt.s32.totalorder %s2621_s28, %s2621_s28 }
  0x65   : > { %p2624_p10 = pnand %p2622_p9, %p2803_p7  ;;  %p2631_p0 = por %p2630_p13, %p2629_p12 }
  0x67   : > { %p2625_p11 = pneg %p2624_p10 }
  0x69   : > { %p2632_p2 = pnand %p2631_p0, %p2625_p11 }
  0x6b   : > { %2635 = shalt.err (!%p2632_p2)
}
  0x6c   : > { %s2687_s29 = smov [#allocation13]   ;;  %p3960_p3 = scmp.ne.s32.totalorder %s3957_s25, 0 }
  0x6d   : > { %2427 = dma.vmem_to_smem (!%p2797_p5), %s415_s27, 16, %s2687_s29, [#allocation14]  }
  0x6e   : > { %449 = sbr.rel (%p3960_p3) target bundleno = 396 (0x18c), region = 60  ;;  %p3961_p1 = scmp.ne.s32.totalorder (!%p3960_p3), %s3956_s24, 0 }
  0x75   : > { %2649 = dma.done.wait (%p3961_p1), [#allocation3], 16  }
  0x76   : > { %2651 = vsyncadd (%p3961_p1), [#allocation3], 4294967280 }
  0x77   : > { %2653 = dma.done.wait (%p3961_p1), [#allocation5], 32  }
  0x78   : > { %2655 = vsyncadd (%p3961_p1), [#allocation5], 4294967264 }
  0x79   : > { %2657 = dma.done.wait (%p3961_p1), [#allocation8], 32  }
  0x7a   : > { %2659 = vsyncadd (%p3961_p1), [#allocation8], 4294967264 }
  0x7b   : > { %2661 = dma.done.wait (%p3961_p1), [#allocation11], 32  }
  0x7c   : > { %2663 = vsyncadd (%p3961_p1), [#allocation11], 4294967264 }
  0x7d   : > { %2665 = dma.done.wait (%p3961_p1), [#allocation14], 16  }
  0x7e   : > { %2667 = vsyncadd (%p3961_p1), [#allocation14], 4294967280 }
  0x7f   : > { %483 = sfence }
  0x80   : > { %p540_p5 = scmp.lt.s32.totalorder %s2670_s17, 1  ;;  %s3962_s0 = sld [smem:[#allocation20_spill]]  ;;  %v2688_v37 = vmov 0.0   ;;  %v2689_v41 = vmov 0.7853982  }
  0x81   : > { %s3002_s24 = sld [smem:[#allocation2]]  ;;  %s3011_s12 = sld [smem:[#allocation2 + $0x1]] }
  0x82   : > { %s3991_s17 = smov (!%p540_p5, %s2670_s17), 1  ;;  %s3013_s21 = sld [smem:[#allocation2 + $0x2]] }
  0x83   : > { %s2886_s25 = sshll.u32 %s3991_s17, 3  ;;  %s2934_s17 = sld [smem:[#allocation4]] }
  0x84   : > { %s555_s16 = scalar_lea.vmem %s3939_s1, %s2886_s25  ;;  %s3024_s23 = sld [smem:[#allocation2 + $0x3]] }
  0x85   : > { %v2904_v4 = vld [vmem:[%s555_s16] sm:$0x3]  ;;  %v2906_v5 = vld [vmem:[%s555_s16 + $0x2] sm:$0x3]  ;;  %v2914_v9 = vld [vmem:[%s555_s16 + $0x4] sm:$0x3] }
  0x86   : > { %s547_s30 = scalar_lea.vmem %s3962_s0, %s2886_s25  ;;  %v2916_v10 = vld [vmem:[%s555_s16 + $0x6] sm:$0x3]  ;;  %v587_v11 = vmul.f32 %v2904_v4, %v2904_v4  ;;  %v597_v12 = vmul.f32 %v2906_v5, %v2906_v5  ;;  %v607_v15 = vmul.f32 %v2914_v9, %v2914_v9  ;;  %v2932_v17 = vand.u32 2147483647, %v2904_v4  ;;  %s3026_s22 = sld [smem:[#allocation4 + $0x1]] }
  0x87   : > { %v2896_v0 = vld [vmem:[%s547_s30] sm:$0x3]  ;;  %v2898_v1 = vld [vmem:[%s547_s30 + $0x2] sm:$0x3]  ;;  %v2900_v2 = vld [vmem:[%s547_s30 + $0x4] sm:$0x3]  ;;  %v617_v16 = vmul.f32 %v2916_v10, %v2916_v10 }
  0x88   : > { %v2902_v3 = vld [vmem:[%s547_s30 + $0x6] sm:$0x3]  ;;  %v586_v6 = vmul.f32 %v2896_v0, %v2896_v0  ;;  %v596_v7 = vmul.f32 %v2898_v1, %v2898_v1  ;;  %v606_v8 = vmul.f32 %v2900_v2, %v2900_v2  ;;  %v2925_v14 = vand.u32 2147483647, %v2896_v0  ;;  %s3038_s27 = sld [smem:[#allocation2 + $0x4]]  ;;  %s3053_s28 = sld [smem:[#allocation2 + $0x5]] }
  0x89   : > { %v616_v13 = vmul.f32 %v2902_v3, %v2902_v3  ;;  %v818_v23 = vstv %s2934_s17  ;;  %vm653_vm0 = vcmp.lt.f32.partialorder %v2896_v0, 0.0  ;;  %vm656_vm1 = vcmp.lt.s32.totalorder %v2896_v0, 0  ;;  %s3068_s29 = sld [smem:[#allocation2 + $0x6]]  ;;  %s3087_s13 = sld [smem:[#allocation2 + $0x7]] }
  0x8a   : > { %v2936_v18 = vadd.f32 %v587_v11, %v586_v6  ;;  %v2938_v19 = vadd.f32 %v597_v12, %v596_v7  ;;  %v2940_v20 = vadd.f32 %v607_v15, %v606_v8  ;;  %v629_v22 = vmax.f32 %v2925_v14, %v2932_v17  ;;  %s3099_s15 = sld [smem:[#allocation4 + $0x2]]  ;;  %s3101_s30 = sld [smem:[#allocation2 + $0x8]] }
  0x8b   : > { %v2942_v21 = vadd.f32 %v617_v16, %v616_v13  ;;  %v2954_v24 = vand.u32 2147483647, %v2898_v1  ;;  %v2957_v25 = vand.u32 2147483647, %v2906_v5  ;;  %v628_v27 = vmin.f32 %v2925_v14, %v2932_v17  ;;  %s3114_s14 = sld [smem:[#allocation2 + $0x9]]  ;;  %s3125_s20 = sld [smem:[#allocation2 + $0xa]] }
  0x8c   : > { %2484 = vrsqrt.f32 %v2936_v18  ;;  %vm591_vm2 = vcmp.eq.f32.partialorder %v2936_v18, inf  ;;  %vm593_vm3 = vcmp.eq.f32.partialorder %v2936_v18, 0.0  ;;  %v594_v26 = vand.u32 2147483648, %v2936_v18  ;;  %s3135_s16 = sld [smem:[#allocation2 + $0xb]]  ;;  %s3137_s17 = sld [smem:[#allocation2 + $0xc]] }
  0x8d   : > { %2486 = vrsqrt.f32 %v2938_v19  ;;  %vm601_vm4 = vcmp.eq.f32.partialorder %v2938_v19, inf  ;;  %vm603_vm5 = vcmp.eq.f32.partialorder %v2938_v19, 0.0  ;;  %v604_v28 = vand.u32 2147483648, %v2938_v19  ;;  %s3529_s0 = sld [smem:[#allocation9 + $0xf]] }
  0x8e   : > { %2488 = vrsqrt.f32 %v2940_v20  ;;  %v676_v29 = vmax.f32 %v2954_v24, %v2957_v25  ;;  %vm611_vm6 = vcmp.eq.f32.partialorder %v2940_v20, inf  ;;  %vm613_vm7 = vcmp.eq.f32.partialorder %v2940_v20, 0.0 }
  0x8f   : > { %2490 = vrsqrt.f32 %v2942_v21  ;;  %v614_v30 = vand.u32 2147483648, %v2940_v20  ;;  %v2973_v31 = vand.u32 2147483647, %v2900_v2  ;;  %vm621_vm8 = vcmp.eq.f32.partialorder %v2942_v21, inf }
  0x90   : > { %2492 = vrcp.f32 %v629_v22  ;;  %vm703_vm9 = vcmp.lt.s32.totalorder %v2898_v1, 0  ;;  %v2978_v33 = vand.u32 2147483647, %v2914_v9  ;;  %vm623_vm10 = vcmp.eq.f32.partialorder %v2942_v21, 0.0 }
  0x91   : > { %2494 = vrcp.f32 %v676_v29  ;;  %v624_v36 = vand.u32 2147483648, %v2942_v21  ;;  %v2985_v38 = vsel %vm656_vm1, 3.1415927, %v2688_v37  ;;  %v2990_v42 = vsel %vm653_vm0, 2.3561945, %v2689_v41 }
  0x92   : > { %v671_v43 = vand.u32 2147483648, %v2904_v4  ;;  %v723_v44 = vmax.f32 %v2973_v31, %v2978_v33  ;;  %vm700_vm11 = vcmp.lt.f32.partialorder %v2898_v1, 0.0  ;;  %v2999_v47 = vsel %vm703_vm9, 3.1415927, %v2688_v37 }
  0x93   : > { %vm750_vm12 = vcmp.lt.s32.totalorder %v2900_v2, 0  ;;  %v675_v50 = vmin.f32 %v2954_v24, %v2957_v25  ;;  %v3009_v51 = vsel %vm700_vm11, 2.3561945, %v2689_v41  ;;  %v718_v55 = vand.u32 2147483648, %v2906_v5 }
  0x94   : > { %2496 = vrcp.f32 %v723_v44  ;;  %v722_v57 = vmin.f32 %v2973_v31, %v2978_v33  ;;  %vm3954_vm13 = vcmp.lt.f32.partialorder %v2900_v2, 0.0  ;;  %v3036_v58 = vsel %vm750_vm12, 3.1415927, %v2688_v37 }
  0x95   : > { %v3048_v61 = vand.u32 2147483647, %v2902_v3  ;;  %v3051_v62 = vand.u32 2147483647, %v2916_v10  ;;  %v3065_v7 = vsel %vm3954_vm13, 2.3561945, %v2689_v41  ;;  %v825_v29 = vstv %s3013_s21 }
  0x96   : > { %v2485_v32 = vpop.eup %2484  ;;  %vm797_vm14 = vcmp.lt.s32.totalorder %v2902_v3, 0  ;;  %v765_v12 = vand.u32 2147483648, %v2914_v9  ;;  %vm3953_vm15 = vcmp.lt.f32.partialorder %v2902_v3, 0.0  ;;  %s3158_s21 = sld [smem:[#allocation2 + $0xe]]  ;;  %vm650_vm1 = vcmp.gt.f32.partialorder %v2932_v17, %v2925_v14 }
  0x97   : > { %v2487_v34 = vpop.eup %2486  ;;  %v590_v35 = vmul.f32 %v2485_v32, %v2936_v18  ;;  %v770_v13 = vmax.f32 %v3048_v61, %v3051_v62  ;;  %vm658_vm9 = vcmp.eq.f32.partialorder %v2904_v4, 0.0  ;;  %vm697_vm12 = vcmp.gt.f32.partialorder %v2957_v25, %v2954_v24 }
  0x98   : > { %v2489_v39 = vpop.eup %2488  ;;  %v600_v40 = vmul.f32 %v2487_v34, %v2938_v19  ;;  %vm760_vm13 = vcmp.eq.s32.totalorder %v2973_v31, inf }
  0x99   : > { %v2491_v45 = vpop.eup %2490  ;;  %v610_v46 = vmul.f32 %v2489_v39, %v2940_v20  ;;  %v592_v52 = vsel %vm591_vm2, %v2936_v18, %v590_v35  ;;  %v769_v18 = vmin.f32 %v3048_v61, %v3051_v62  ;;  %2498 = vrcp.f32 %v770_v13 }
  0x9a   : > { %v2493_v48 = vpop.eup %2492  ;;  %v620_v49 = vmul.f32 %v2491_v45, %v2942_v21  ;;  %v602_v53 = vsel %vm601_vm4, %v2938_v19, %v600_v40  ;;  %v3057_v63 = vsel %vm593_vm3, %v594_v26, %v592_v52  ;;  %v3085_v19 = vsel %vm797_vm14, 3.1415927, %v2688_v37 }
  0x9b   : > { %v3021_v54 = vmul.f32 %v2493_v48, %v628_v27  ;;  %v612_v56 = vsel %vm611_vm6, %v2940_v20, %v610_v46  ;;  %v3061_v6 = vsel %vm603_vm5, %v604_v28, %v602_v53  ;;  %v2495_v15 = vpop.eup %2494  ;;  %v812_v26 = vand.u32 2147483648, %v2916_v10 }
  0x9c   : > { %v622_v59 = vsel %vm621_vm8, %v2942_v21, %v620_v49  ;;  %v3072_v8 = vsel %vm613_vm7, %v614_v30, %v612_v56  ;;  %v3089_v22 = vmul.f32 %v2495_v15, %v675_v50  ;;  %v3093_v21 = vsel %vm3953_vm15, 2.3561945, %v2689_v41 }
  0x9d   : > { %v3045_v60 = vmul.f32 %v3021_v54, %v3021_v54  ;;  %v3080_v16 = vsel %vm623_vm10, %v624_v36, %v622_v59  ;;  %v816_v27 = vstv %s3002_s24  ;;  %v821_v28 = vstv %s3011_s12  ;;  %s3144_s24 = sld [smem:[#allocation4 + $0x3]]  ;;  %s3149_s12 = sld [smem:[#allocation2 + $0xd]] }
  0x9e   : > { %v3106_v32 = vmul.f32 %v3089_v22, %v3089_v22  ;;  %v817_v34 = vmul.f32 %v816_v27, %v3057_v63  ;;  %v822_v35 = vmul.f32 %v821_v28, %v3061_v6  ;;  %v2497_v36 = vpop.eup %2496  ;;  %v826_v37 = vmul.f32 %v825_v29, %v3072_v8 }
  0x9f   : > { %v633_v11 = vmul.f32 0.002785687, %v3045_v60  ;;  %v829_v39 = vstv %s3024_s23  ;;  %v834_v40 = vstv %s3038_s27  ;;  %v836_v41 = vstv %s3026_s22  ;;  %s3167_s23 = sld [smem:[#allocation2 + $0xf]]  ;;  %s3188_s22 = sld [smem:[#allocation7]] }
  0xa0   : > { %v680_v45 = vmul.f32 0.002785687, %v3106_v32  ;;  %v3117_v46 = vmul.f32 %v2497_v36, %v722_v57  ;;  %v819_v48 = vadd.f32 %v818_v23, %v817_v34  ;;  %v830_v49 = vmul.f32 %v829_v39, %v3080_v16  ;;  %s3190_s27 = sld [smem:[#allocation6]] }
  0xa1   : > { %v634_v20 = vadd.f32 -0.015866, %v633_v11  ;;  %v835_v50 = vmul.f32 %v834_v40, %v3057_v63  ;;  %v839_v52 = vstv %s3053_s28  ;;  %v843_v53 = vstv %s3068_s29  ;;  %s3194_s28 = sld [smem:[#allocation6 + $0x1]]  ;;  %s3201_s29 = sld [smem:[#allocation6 + $0x2]] }
  0xa2   : > { %v681_v59 = vadd.f32 -0.015866, %v680_v45  ;;  %v3130_v11 = vmul.f32 %v3117_v46, %v3117_v46  ;;  %v823_v57 = vadd.f32 %v822_v35, %v819_v48  ;;  %v840_v23 = vmul.f32 %v839_v52, %v3061_v6 }
  0xa3   : > { %v635_v30 = vmul.f32 %v634_v20, %v3045_v60  ;;  %v837_v13 = vadd.f32 %v836_v41, %v835_v50  ;;  %v844_v15 = vmul.f32 %v843_v53, %v3072_v8  ;;  %v847_v20 = vstv %s3087_s13  ;;  %v2499_v40 = vpop.eup %2498  ;;  %s3214_s13 = sld [smem:[#allocation6 + $0x3]] }
  0xa4   : > { %v682_v28 = vmul.f32 %v681_v59, %v3106_v32  ;;  %v727_v29 = vmul.f32 0.002785687, %v3130_v11  ;;  %v848_v35 = vmul.f32 %v847_v20, %v3080_v16  ;;  %v852_v36 = vstv %s3101_s30  ;;  %s3231_s30 = sld [smem:[#allocation7 + $0x1]] }
  0xa5   : > { %v636_v44 = vadd.f32 0.04247222, %v635_v30  ;;  %v827_v30 = vadd.f32 %v826_v37, %v823_v57  ;;  %v841_v34 = vadd.f32 %v840_v23, %v837_v13  ;;  %v854_v39 = vstv %s3099_s15  ;;  %s3226_s15 = sld [smem:[#allocation6 + $0x4]] }
  0xa6   : > { %v728_v45 = vadd.f32 -0.015866, %v727_v29  ;;  %v3151_v50 = vmul.f32 %v2499_v40, %v769_v18  ;;  %v853_v52 = vmul.f32 %v852_v36, %v3057_v63  ;;  %v857_v53 = vstv %s3114_s14  ;;  %s3239_s14 = sld [smem:[#allocation6 + $0x5]] }
  0xa7   : > { %v637_v56 = vmul.f32 %v636_v44, %v3045_v60  ;;  %v683_v44 = vadd.f32 0.04247222, %v682_v28  ;;  %v3147_v48 = vadd.f32 %v830_v49, %v827_v30  ;;  %v845_v37 = vadd.f32 %v844_v15, %v841_v34 }
  0xa8   : > { %v729_v57 = vmul.f32 %v728_v45, %v3130_v11  ;;  %v858_v13 = vmul.f32 %v857_v53, %v3061_v6  ;;  %v3162_v49 = vmul.f32 %v3151_v50, %v3151_v50  ;;  %v855_v23 = vadd.f32 %v854_v39, %v853_v52 }
  0xa9   : > { %v638_v27 = vadd.f32 -0.074975304, %v637_v56  ;;  %v684_v59 = vmul.f32 %v683_v44, %v3106_v32  ;;  %v3164_v18 = vadd.f32 %v848_v35, %v845_v37  ;;  %v861_v15 = vstv %s3125_s20  ;;  %s3258_s20 = sld [smem:[#allocation6 + $0x6]] }
  0xaa   : > { %v730_v28 = vadd.f32 0.04247222, %v729_v57  ;;  %v862_v29 = vmul.f32 %v861_v15, %v3072_v8  ;;  %v774_v30 = vmul.f32 0.002785687, %v3162_v49  ;;  %v859_v34 = vadd.f32 %v858_v13, %v855_v23 }
  0xab   : > { %v639_v41 = vmul.f32 %v638_v27, %v3045_v60  ;;  %v685_v27 = vadd.f32 -0.074975304, %v684_v59  ;;  %v865_v36 = vstv %s3135_s16  ;;  %v870_v40 = vstv %s3137_s17  ;;  %s3270_s16 = sld [smem:[#allocation6 + $0x7]]  ;;  %s3272_s17 = sld [smem:[#allocation6 + $0x8]] }
  0xac   : > { %v731_v39 = vmul.f32 %v730_v28, %v3130_v11  ;;  %v866_v44 = vmul.f32 %v865_v36, %v3080_v16  ;;  %v775_v45 = vadd.f32 -0.015866, %v774_v30  ;;  %v863_v37 = vadd.f32 %v862_v29, %v859_v34 }
  0xad   : > { %v640_v56 = vadd.f32 0.1064488, %v639_v41  ;;  %v686_v35 = vmul.f32 %v685_v27, %v3106_v32  ;;  %v871_v52 = vmul.f32 %v870_v40, %v3057_v63  ;;  %v872_v53 = vstv %s3144_s24  ;;  %s3308_s24 = sld [smem:[#allocation7 + $0x2]] }
  0xae   : > { %v732_v57 = vadd.f32 -0.074975304, %v731_v39  ;;  %v875_v13 = vstv %s3149_s12  ;;  %v776_v23 = vmul.f32 %v775_v45, %v3162_v49  ;;  %v867_v15 = vadd.f32 %v866_v44, %v863_v37  ;;  %s3314_s12 = sld [smem:[#allocation6 + $0x9]] }
  0xaf   : > { %v641_v20 = vmul.f32 %v640_v56, %v3045_v60  ;;  %v687_v59 = vadd.f32 0.1064488, %v686_v35  ;;  %v876_v27 = vmul.f32 %v875_v13, %v3061_v6  ;;  %v879_v30 = vstv %s3158_s21  ;;  %s3322_s21 = sld [smem:[#allocation6 + $0xa]] }
  0xb0   : > { %v733_v29 = vmul.f32 %v732_v57, %v3130_v11  ;;  %v777_v63 = vadd.f32 0.04247222, %v776_v23  ;;  %v880_v40 = vmul.f32 %v879_v30, %v3072_v8  ;;  %vm886_vm2 = vcmp.ge.f32.partialorder %v3147_v48, 0.0 }
  0xb1   : > { %v642_v41 = vadd.f32 -0.14207031, %v641_v20  ;;  %v873_v20 = vadd.f32 %v872_v53, %v871_v52  ;;  %v688_v36 = vmul.f32 %v687_v59, %v3106_v32  ;;  %v887_v8 = vmul.f32 0.1, %v3147_v48 }
  0xb2   : > { %v734_v44 = vadd.f32 0.1064488, %v733_v29  ;;  %v778_v45 = vmul.f32 %v777_v63, %v3162_v49  ;;  %vm889_vm3 = vcmp.ge.f32.partialorder %v3164_v18, 0.0  ;;  %vm660_vm4 = vcmp.ne.f32.partialorder %v2896_v0, %v2896_v0 }
  0xb3   : > { %v643_v56 = vmul.f32 %v642_v41, %v3045_v60  ;;  %v877_v34 = vadd.f32 %v876_v27, %v873_v20  ;;  %v883_v41 = vstv %s3167_s23  ;;  %v689_v39 = vadd.f32 -0.14207031, %v688_v36  ;;  %s3334_s23 = sld [smem:[#allocation6 + $0xb]] }
  0xb4   : > { %v884_v6 = vmul.f32 %v883_v41, %v3080_v16  ;;  %vm661_vm5 = vcmp.ne.f32.partialorder %v2904_v4, %v2904_v4  ;;  %v779_v16 = vadd.f32 -0.074975304, %v778_v45  ;;  %v3211_v57 = vsel %vm886_vm2, %v3147_v48, %v887_v8 }
  0xb5   : > { %v644_v28 = vadd.f32 0.19993454, %v643_v56  ;;  %v881_v37 = vadd.f32 %v880_v40, %v877_v34  ;;  %v690_v53 = vmul.f32 %v689_v39, %v3106_v32  ;;  %v735_v56 = vmul.f32 %v734_v44, %v3130_v11 }
  0xb6   : > { %v890_v13 = vmul.f32 0.1, %v3164_v18  ;;  %vm666_vm6 = vcmp.eq.s32.totalorder %v2925_v14, inf  ;;  %vm667_vm7 = vcmp.eq.s32.totalorder %v2932_v17, inf  ;;  %vm892_vm8 = vcmp.ge.f32.partialorder %v867_v15, 0.0 }
  0xb7   : > { %v645_v35 = vmul.f32 %v644_v28, %v3045_v60  ;;  %v885_v59 = vadd.f32 %v884_v6, %v881_v37  ;;  %v691_v20 = vadd.f32 0.19993454, %v690_v53  ;;  %v736_v27 = vadd.f32 -0.14207031, %v735_v56 }
  0xb8   : > { %v780_v48 = vmul.f32 %v779_v16, %v3162_v49  ;;  %v3224_v28 = vsel %vm889_vm3, %v3164_v18, %v890_v13  ;;  %v893_v36 = vmul.f32 0.1, %v867_v15  ;;  %v900_v40 = vstv %s3190_s27  ;;  %s3373_s27 = sld [smem:[#allocation7 + $0x3]] }
  0xb9   : > { %v646_v52 = vadd.f32 -0.33333147, %v645_v35  ;;  %vm895_vm10 = vcmp.ge.f32.partialorder %v885_v59, 0.0  ;;  %v692_v29 = vmul.f32 %v691_v20, %v3106_v32  ;;  %v737_v30 = vmul.f32 %v736_v27, %v3130_v11 }
  0xba   : > { %v896_v63 = vmul.f32 0.1, %v885_v59  ;;  %v781_v18 = vadd.f32 0.1064488, %v780_v48  ;;  %v3235_v34 = vsel %vm892_vm8, %v867_v15, %v893_v36  ;;  %v902_v41 = vstv %s3188_s22  ;;  %s3336_s22 = sld [smem:[#allocation6 + $0xc]] }
  0xbb   : > { %v647_v23 = vmul.f32 %v646_v52, %v3045_v60  ;;  %v693_v39 = vadd.f32 -0.33333147, %v692_v29  ;;  %v738_v44 = vadd.f32 0.19993454, %v737_v30  ;;  %vm707_vm14 = vcmp.ne.f32.partialorder %v2898_v1, %v2898_v1 }
  0xbc   : > { %v3243_v6 = vsel %vm895_vm10, %v885_v59, %v896_v63  ;;  %vm708_vm2 = vcmp.ne.f32.partialorder %v2906_v5, %v2906_v5  ;;  %v782_v15 = vmul.f32 %v781_v18, %v3162_v49  ;;  %v901_v45 = vmul.f32 %v900_v40, %v3211_v57 }
  0xbd   : > { %v648_v60 = vmul.f32 %v647_v23, %v3021_v54  ;;  %v905_v37 = vstv %s3194_s28  ;;  %v909_v8 = vstv %s3201_s29  ;;  %vm713_vm3 = vcmp.eq.s32.totalorder %v2954_v24, inf  ;;  %s3375_s28 = sld [smem:[#allocation6 + $0xd]]  ;;  %s3385_s29 = sld [smem:[#allocation6 + $0xe]] }
  0xbe   : > { %vm714_vm8 = vcmp.eq.s32.totalorder %v2957_v25, inf  ;;  %v739_v53 = vmul.f32 %v738_v44, %v3130_v11  ;;  %v906_v56 = vmul.f32 %v905_v37, %v3224_v28  ;;  %vm705_vm10 = vcmp.eq.f32.partialorder %v2906_v5, 0.0 }
  0xbf   : > { %v649_v35 = vadd.f32 %v648_v60, %v3021_v54  ;;  %v694_v54 = vmul.f32 %v693_v39, %v3106_v32  ;;  %v783_v16 = vadd.f32 -0.14207031, %v782_v15  ;;  %v903_v59 = vadd.f32 %v902_v41, %v901_v45 }
  0xc0   : > { %v910_v32 = vmul.f32 %v909_v8, %v3235_v34  ;;  %v913_v13 = vstv %s3214_s13  ;;  %v740_v27 = vadd.f32 -0.33333147, %v739_v53  ;;  %v918_v30 = vstv %s3226_s15  ;;  %s3387_s13 = sld [smem:[#allocation6 + $0xf]]  ;;  %s3393_s15 = sld [smem:[#allocation9]] }
  0xc1   : > { %v651_v52 = vsub.f32 1.5707964, %v649_v35  ;;  %v695_v20 = vmul.f32 %v694_v54, %v3089_v22  ;;  %v914_v48 = vmul.f32 %v913_v13, %v3243_v6  ;;  %v784_v60 = vmul.f32 %v783_v16, %v3162_v49 }
  0xc2   : > { %v907_v29 = vadd.f32 %v906_v56, %v903_v59  ;;  %v741_v40 = vmul.f32 %v740_v27, %v3130_v11  ;;  %vm761_vm15 = vcmp.eq.s32.totalorder %v2978_v33, inf  ;;  %v919_v41 = vmul.f32 %v918_v30, %v3211_v57 }
  0xc3   : > { %v652_v23 = vsel %vm650_vm1, %v651_v52, %v649_v35  ;;  %vm3286_vm1 = vmor %vm660_vm4, %vm661_vm5  ;;  %v696_v18 = vadd.f32 %v695_v20, %v3089_v22  ;;  %v920_v35 = vstv %s3231_s30  ;;  %vm752_vm5 = vcmp.eq.f32.partialorder %v2914_v9, 0.0  ;;  %s3419_s30 = sld [smem:[#allocation10]] }
  0xc4   : > { %v654_v36 = vsub.f32 3.1415927, %v652_v23  ;;  %vm3302_vm4 = vmand %vm666_vm6, %vm667_vm7  ;;  %v785_v22 = vadd.f32 0.19993454, %v784_v60  ;;  %v911_v11 = vadd.f32 %v910_v32, %v907_v29  ;;  %v923_v15 = vstv %s3239_s14  ;;  %s3427_s14 = sld [smem:[#allocation9 + $0x1]] }
  0xc5   : > { %v698_v45 = vsub.f32 1.5707964, %v696_v18  ;;  %v742_v17 = vmul.f32 %v741_v40, %v3117_v46  ;;  %v921_v14 = vadd.f32 %v920_v35, %v919_v41  ;;  %v924_v54 = vmul.f32 %v923_v15, %v3224_v28  ;;  %vm3344_vm6 = vmor %vm707_vm14, %vm708_vm2 }
  0xc6   : > { %v655_v39 = vsel %vm653_vm0, %v654_v36, %v652_v23  ;;  %v786_v8 = vmul.f32 %v785_v22, %v3162_v49  ;;  %v3319_v52 = vadd.f32 %v914_v48, %v911_v11  ;;  %vm791_vm0 = vcmp.gt.f32.partialorder %v3051_v62, %v3048_v61 }
  0xc7   : > { %v659_v0 = vsel %vm658_vm9, %v2985_v38, %v655_v39  ;;  %v699_v53 = vsel %vm697_vm12, %v698_v45, %v696_v18  ;;  %v743_v56 = vadd.f32 %v742_v17, %v3117_v46  ;;  %v927_v16 = vstv %s3258_s20  ;;  %vm3365_vm12 = vmand %vm713_vm3, %vm714_vm8  ;;  %s3429_s20 = sld [smem:[#allocation9 + $0x2]] }
  0xc8   : > { %v663_v37 = vsel %vm3286_vm1, nan, %v659_v0  ;;  %v701_v32 = vsub.f32 3.1415927, %v699_v53  ;;  %v787_v13 = vadd.f32 -0.33333147, %v786_v8  ;;  %vm801_vm7 = vcmp.ne.f32.partialorder %v2902_v3, %v2902_v3 }
  0xc9   : > { %v669_v38 = vsel %vm3302_vm4, %v2990_v42, %v663_v37  ;;  %v925_v42 = vadd.f32 %v924_v54, %v921_v14  ;;  %v745_v23 = vsub.f32 1.5707964, %v743_v56  ;;  %vm802_vm9 = vcmp.ne.f32.partialorder %v2916_v10, %v2916_v10 }
  0xca   : > { %v670_v59 = vand.u32 2147483647, %v669_v38  ;;  %v928_v20 = vmul.f32 %v927_v16, %v3235_v34  ;;  %v931_v27 = vstv %s3270_s16  ;;  %v936_v48 = vstv %s3272_s17  ;;  %s3441_s16 = sld [smem:[#allocation9 + $0x3]]  ;;  %s3443_s17 = sld [smem:[#allocation9 + $0x4]] }
  0xcb   : > { %v702_v60 = vsel %vm700_vm11, %v701_v32, %v699_v53  ;;  %v788_v30 = vmul.f32 %v787_v13, %v3162_v49  ;;  %vm807_vm14 = vcmp.eq.s32.totalorder %v3048_v61, inf  ;;  %vm808_vm2 = vcmp.eq.s32.totalorder %v3051_v62, inf }
  0xcc   : > { %v3357_v36 = vor.u32 %v671_v43, %v670_v59  ;;  %v932_v4 = vmul.f32 %v931_v27, %v3243_v6  ;;  %v706_v1 = vsel %vm705_vm10, %v2999_v47, %v702_v60  ;;  %vm3971_vm11 = vcmp.gt.f32.partialorder %v2978_v33, %v2973_v31 }
  0xcd   : > { %v746_v24 = vsel %vm3971_vm11, %v745_v23, %v743_v56  ;;  %vm799_vm3 = vcmp.eq.f32.partialorder %v2916_v10, 0.0  ;;  %v929_v25 = vadd.f32 %v928_v20, %v925_v42  ;;  %v937_v43 = vmul.f32 %v936_v48, %v3211_v57 }
  0xce   : > { %v710_v49 = vsel %vm3344_vm6, nan, %v706_v1  ;;  %v748_v63 = vsub.f32 3.1415927, %v746_v24  ;;  %v789_v47 = vmul.f32 %v788_v30, %v3151_v50  ;;  %v938_v18 = vstv %s3308_s24  ;;  %vm762_vm6 = vmand %vm760_vm13, %vm761_vm15  ;;  %s3450_s24 = sld [smem:[#allocation10 + $0x1]] }
  0xcf   : > { %v716_v40 = vsel %vm3365_vm12, %v3009_v51, %v710_v49  ;;  %vm3972_vm8 = vcmp.ne.f32.partialorder %v2914_v9, %v2914_v9  ;;  %vm3973_vm10 = vcmp.ne.f32.partialorder %v2900_v2, %v2900_v2  ;;  %v3408_v35 = vadd.f32 %v932_v4, %v929_v25  ;;  %vm3469_vm13 = vmor %vm801_vm7, %vm802_vm9 }
  0xd0   : > { %vm3404_vm1 = vmor %vm3973_vm10, %vm3972_vm8  ;;  %v939_v39 = vadd.f32 %v938_v18, %v937_v43  ;;  %v941_v44 = vstv %s3314_s12  ;;  %v717_v22 = vand.u32 2147483647, %v716_v40  ;;  %vm3976_vm4 = vcmp.lt.f32.partialorder %v2900_v2, 0.0  ;;  %s3452_s12 = sld [smem:[#allocation9 + $0x5]] }
  0xd1   : > { %v749_v11 = vsel %vm3976_vm4, %v748_v63, %v746_v24  ;;  %v790_v51 = vadd.f32 %v789_v47, %v3151_v50  ;;  %v942_v15 = vmul.f32 %v941_v44, %v3224_v28  ;;  %v945_v45 = vstv %s3322_s21  ;;  %s3455_s21 = sld [smem:[#allocation9 + $0x6]] }
  0xd2   : > { %v753_v0 = vsel %vm752_vm5, %v3036_v58, %v749_v11  ;;  %v949_v17 = vstv %s3334_s23  ;;  %v954_v2 = vstv %s3336_s22  ;;  %v3433_v31 = vor.u32 %v718_v55, %v717_v22  ;;  %s3457_s23 = sld [smem:[#allocation9 + $0x7]]  ;;  %s3476_s22 = sld [smem:[#allocation9 + $0x8]]  ;;  %vm3484_vm5 = vmand %vm807_vm14, %vm808_vm2 }
  0xd3   : > { %v757_v33 = vsel %vm3404_vm1, nan, %v753_v0  ;;  %v792_v50 = vsub.f32 1.5707964, %v790_v51  ;;  %v943_v14 = vadd.f32 %v942_v15, %v939_v39  ;;  %v946_v37 = vmul.f32 %v945_v45, %v3235_v34 }
  0xd4   : > { %v763_v58 = vsel %vm762_vm6, %v3065_v7, %v757_v33  ;;  %v950_v8 = vmul.f32 %v949_v17, %v3243_v6  ;;  %v955_v54 = vmul.f32 %v954_v2, %v3211_v57  ;;  %v956_v38 = vstv %s3373_s27  ;;  %s3491_s27 = sld [smem:[#allocation10 + $0x2]] }
  0xd5   : > { %v764_v5 = vand.u32 2147483647, %v763_v58  ;;  %v793_v55 = vsel %vm791_vm0, %v792_v50, %v790_v51  ;;  %v959_v7 = vstv %s3375_s28  ;;  %v947_v57 = vadd.f32 %v946_v37, %v943_v14  ;;  %s3493_s28 = sld [smem:[#allocation9 + $0x9]] }
  0xd6   : > { %v795_v53 = vsub.f32 3.1415927, %v793_v55  ;;  %v957_v56 = vadd.f32 %v956_v38, %v955_v54  ;;  %v960_v16 = vmul.f32 %v959_v7, %v3224_v28  ;;  %v963_v28 = vstv %s3385_s29  ;;  %s3501_s29 = sld [smem:[#allocation9 + $0xa]] }
  0xd7   : > { %v3461_v59 = vor.u32 %v765_v12, %v764_v5  ;;  %v967_v13 = vstv %s3387_s13  ;;  %v972_v42 = vstv %s3393_s15  ;;  %vm3979_vm15 = vcmp.lt.f32.partialorder %v2902_v3, 0.0  ;;  %s3503_s13 = sld [smem:[#allocation9 + $0xb]] }
  0xd8   : > { %v796_v9 = vsel %vm3979_vm15, %v795_v53, %v793_v55  ;;  %v3488_v46 = vadd.f32 %v950_v8, %v947_v57  ;;  %v961_v23 = vadd.f32 %v960_v16, %v957_v56  ;;  %v964_v20 = vmul.f32 %v963_v28, %v3235_v34  ;;  %s3514_s15 = sld [smem:[#allocation10 + $0x3]] }
  0xd9   : > { %v800_v3 = vsel %vm799_vm3, %v3085_v19, %v796_v9  ;;  %v968_v61 = vmul.f32 %v967_v13, %v3243_v6  ;;  %v973_v62 = vmul.f32 %v972_v42, %v3357_v36  ;;  %v974_v27 = vstv %s3419_s30  ;;  %s3516_s30 = sld [smem:[#allocation9 + $0xc]] }
  0xda   : > { %v804_v34 = vsel %vm3469_vm13, nan, %v800_v3  ;;  %v965_v48 = vadd.f32 %v964_v20, %v961_v23  ;;  %v977_v60 = vstv %s3427_s14  ;;  %v981_v29 = vstv %s3429_s20  ;;  %s3522_s14 = sld [smem:[#allocation9 + $0xd]]  ;;  %s3524_s20 = sld [smem:[#allocation9 + $0xe]] }
  0xdb   : > { %v810_v19 = vsel %vm3484_vm5, %v3093_v21, %v804_v34  ;;  %v975_v6 = vadd.f32 %v974_v27, %v973_v62  ;;  %v978_v30 = vmul.f32 %v977_v60, %v3433_v31  ;;  %v982_v4 = vmul.f32 %v981_v29, %v3461_v59 }
  0xdc   : > { %v811_v1 = vand.u32 2147483647, %v810_v19  ;;  %v3518_v24 = vadd.f32 %v968_v61, %v965_v48  ;;  %v985_v25 = vstv %s3441_s16  ;;  %v990_v43 = vstv %s3443_s17  ;;  %s3538_s16 = sld [smem:[#allocation12]] }
  0xdd   : > { %v979_v21 = vadd.f32 %v978_v30, %v975_v6  ;;  %v991_v49 = vmul.f32 %v990_v43, %v3357_v36  ;;  %v992_v63 = vstv %s3450_s24  ;;  %v995_v47 = vstv %s3452_s12  ;;  %s3542_s17 = sld [smem:[#allocation13]]  ;;  %s3544_s24 = sld [smem:[#allocation12 + $0x1]] }
  0xde   : > { %v813_v18 = vor.u32 %v812_v26, %v811_v1  ;;  %v996_v40 = vmul.f32 %v995_v47, %v3433_v31  ;;  %v999_v41 = vstv %s3455_s21  ;;  %v1003_v39 = vstv %s3457_s23  ;;  %s3549_s12 = sld [smem:[#allocation12 + $0x2]]  ;;  %s3551_s21 = sld [smem:[#allocation12 + $0x3]] }
  0xdf   : > { %v983_v44 = vadd.f32 %v982_v4, %v979_v21  ;;  %v993_v22 = vadd.f32 %v992_v63, %v991_v49  ;;  %v1000_v11 = vmul.f32 %v999_v41, %v3461_v59  ;;  %v1008_v51 = vstv %s3476_s22  ;;  %s3555_s23 = sld [smem:[#allocation13 + $0x1]]  ;;  %s3559_s22 = sld [smem:[#allocation12 + $0x4]] }
  0xe0   : > { %v986_v15 = vmul.f32 %v985_v25, %v813_v18  ;;  %v1004_v0 = vmul.f32 %v1003_v39, %v813_v18  ;;  %v1009_v45 = vmul.f32 %v1008_v51, %v3357_v36  ;;  %v1010_v10 = vstv %s3491_s27  ;;  %s3561_s27 = sld [smem:[#allocation12 + $0x5]] }
  0xe1   : > { %v997_v26 = vadd.f32 %v996_v40, %v993_v22  ;;  %v1013_v17 = vstv %s3493_s28  ;;  %v1017_v2 = vstv %s3501_s29  ;;  %v1021_v33 = vstv %s3503_s13  ;;  %s3566_s28 = sld [smem:[#allocation12 + $0x6]]  ;;  %s3571_s29 = sld [smem:[#allocation12 + $0x7]] }
  0xe2   : > { %v987_v50 = vadd.f32 %v986_v15, %v983_v44  ;;  %v1011_v14 = vadd.f32 %v1010_v10, %v1009_v45  ;;  %v1014_v58 = vmul.f32 %v1013_v17, %v3433_v31  ;;  %v1018_v37 = vmul.f32 %v1017_v2, %v3461_v59  ;;  %s3573_s13 = sld [smem:[#allocation13 + $0x2]] }
  0xe3   : > { %v1001_v8 = vadd.f32 %v1000_v11, %v997_v26  ;;  %v1022_v54 = vmul.f32 %v1021_v33, %v813_v18  ;;  %v1026_v5 = vstv %s3516_s30  ;;  %v1028_v55 = vstv %s3514_s15  ;;  %s3575_s15 = sld [smem:[#allocation12 + $0x8]]  ;;  %s3577_s30 = sld [smem:[#allocation12 + $0x9]] }
  0xe4   : > { %v1015_v38 = vadd.f32 %v1014_v58, %v1011_v14  ;;  %v1027_v7 = vmul.f32 %v1026_v5, %v3357_v36  ;;  %v1031_v53 = vstv %s3522_s14  ;;  %v1035_v57 = vstv %s3524_s20  ;;  %s3586_s14 = sld [smem:[#allocation12 + $0xb]] }
  0xe5   : > { %v1005_v56 = vadd.f32 %v1004_v0, %v1001_v8  ;;  %v1032_v16 = vmul.f32 %v1031_v53, %v3433_v31  ;;  %v1036_v32 = vmul.f32 %v1035_v57, %v3461_v59  ;;  %v1039_v28 = vstv %s3529_s0  ;;  %s3584_s0 = sld [smem:[#allocation12 + $0xa]]  ;;  %s3591_s20 = sld [smem:[#allocation13 + $0x3]] }
  0xe6   : > { %v1019_v13 = vadd.f32 %v1018_v37, %v1015_v38  ;;  %v1029_v36 = vadd.f32 %v1028_v55, %v1027_v7  ;;  %v1040_v42 = vmul.f32 %v1039_v28, %v813_v18  ;;  %vm1042_vm0 = vcmp.ge.f32.partialorder %v987_v50, 0.0 }
  0xe7   : > { %v1043_v31 = vmul.f32 0.1, %v987_v50  ;;  %vm1045_vm7 = vcmp.ge.f32.partialorder %v1005_v56, 0.0  ;;  %v1046_v59 = vmul.f32 0.1, %v1005_v56  ;;  %v1056_v9 = vstv %s3538_s16  ;;  %s3593_s16 = sld [smem:[#allocation12 + $0xc]] }
  0xe8   : > { %v1023_v12 = vadd.f32 %v1022_v54, %v1019_v13  ;;  %v1033_v23 = vadd.f32 %v1032_v16, %v1029_v36  ;;  %v1058_v20 = vstv %s3542_s17  ;;  %v1061_v3 = vstv %s3544_s24  ;;  %s3595_s17 = sld [smem:[#allocation12 + $0xd]]  ;;  %s3599_s24 = sld [smem:[#allocation12 + $0xe]] }
  0xe9   : > { %v1044_v61 = vsel %vm1042_vm0, %v987_v50, %v1043_v31  ;;  %v1047_v62 = vsel %vm1045_vm7, %v1005_v56, %v1046_v59  ;;  %v1065_v27 = vstv %s3549_s12  ;;  %v1069_v34 = vstv %s3551_s21  ;;  %s3601_s12 = sld [smem:[#allocation12 + $0xf]] }
  0xea   : > { %v1037_v48 = vadd.f32 %v1036_v32, %v1033_v23  ;;  %vm1048_vm9 = vcmp.ge.f32.partialorder %v1023_v12, 0.0  ;;  %v1049_v60 = vmul.f32 0.1, %v1023_v12  ;;  %v1057_v29 = vmul.f32 %v1056_v9, %v1044_v61 }
  0xeb   : > { %v1062_v19 = vmul.f32 %v1061_v3, %v1047_v62  ;;  %v1074_v6 = vstv %s3559_s22  ;;  %v1076_v30 = vstv %s3555_s23  ;;  %v1079_v4 = vstv %s3561_s27  ;;  %s3844_s22 = scalar_lea.vmem %s3948_s10, %s2886_s25 }
  0xec   : > { %v1041_v1 = vadd.f32 %v1040_v42, %v1037_v48  ;;  %v1050_v25 = vsel %vm1048_vm9, %v1023_v12, %v1049_v60  ;;  %v1059_v43 = vadd.f32 %v1058_v20, %v1057_v29  ;;  %v1075_v21 = vmul.f32 %v1074_v6, %v1044_v61 }
  0xed   : > { %v1066_v49 = vmul.f32 %v1065_v27, %v1050_v25  ;;  %v1080_v63 = vmul.f32 %v1079_v4, %v1047_v62  ;;  %v1083_v47 = vstv %s3566_s28  ;;  %v1087_v18 = vstv %s3571_s29  ;;  %s3850_s29 = scalar_lea.vmem %s3949_s11, %s2886_s25 }
  0xee   : > { %vm1051_vm12 = vcmp.ge.f32.partialorder %v1041_v1, 0.0  ;;  %v1052_v40 = vmul.f32 0.1, %v1041_v1  ;;  %v1063_v41 = vadd.f32 %v1062_v19, %v1059_v43  ;;  %v1077_v39 = vadd.f32 %v1076_v30, %v1075_v21 }
  0xef   : > { %v1084_v44 = vmul.f32 %v1083_v47, %v1050_v25  ;;  %v1092_v22 = vstv %s3575_s15  ;;  %v1094_v11 = vstv %s3573_s13  ;;  %v1097_v51 = vstv %s3577_s30 }
  0xf0   : > { %v1053_v15 = vsel %vm1051_vm12, %v1041_v1, %v1052_v40  ;;  %v1067_v0 = vadd.f32 %v1066_v49, %v1063_v41  ;;  %v1081_v45 = vadd.f32 %v1080_v63, %v1077_v39  ;;  %v1093_v10 = vmul.f32 %v1092_v22, %v1044_v61 }
  0xf1   : > { %v1070_v26 = vmul.f32 %v1069_v34, %v1053_v15  ;;  %v1098_v17 = vmul.f32 %v1097_v51, %v1047_v62  ;;  %v1101_v2 = vstv %s3584_s0  ;;  %v1088_v33 = vmul.f32 %v1087_v18, %v1053_v15 }
  0xf2   : > { %v1095_v50 = vadd.f32 %v1094_v11, %v1093_v10  ;;  %v1102_v14 = vmul.f32 %v1101_v2, %v1050_v25  ;;  %v1105_v58 = vstv %s3586_s14  ;;  %v1085_v8 = vadd.f32 %v1084_v44, %v1081_v45 }
  0xf3   : > { %v3608_v37 = vadd.f32 %v1070_v26, %v1067_v0  ;;  %v1110_v54 = vstv %s3593_s16  ;;  %v1112_v5 = vstv %s3591_s20  ;;  %v1115_v7 = vstv %s3595_s17 }
  0xf4   : > { %v1099_v55 = vadd.f32 %v1098_v17, %v1095_v50  ;;  %v1111_v38 = vmul.f32 %v1110_v54, %v1044_v61  ;;  %v1106_v53 = vmul.f32 %v1105_v58, %v1053_v15  ;;  %v1116_v57 = vmul.f32 %v1115_v7, %v1047_v62 }
  0xf5   : > { %v1119_v56 = vstv %s3599_s24  ;;  %v1123_v16 = vstv %s3601_s12  ;;  %v1126_v36 = vand.u32 2147483647, %v3608_v37  ;;  %v3616_v42 = vadd.f32 %v1088_v33, %v1085_v8 }
  0xf6   : > { %v1103_v32 = vadd.f32 %v1102_v14, %v1099_v55  ;;  %v1113_v28 = vadd.f32 %v1112_v5, %v1111_v38  ;;  %v1120_v13 = vmul.f32 %v1119_v56, %v1050_v25  ;;  %v1129_v31 = vand.u32 2139095040, %v3608_v37 }
  0xf7   : > { %v1124_v9 = vmul.f32 %v1123_v16, %v1053_v15  ;;  %v1133_v3 = vand.u32 8388607, %v1126_v36  ;;  %v1337_v61 = vand.u32 2147483647, %v3616_v42  ;;  %v1340_v27 = vand.u32 2139095040, %v3616_v42 }
  0xf8   : > { %v1117_v59 = vadd.f32 %v1116_v57, %v1113_v28  ;;  %v3619_v12 = vadd.f32 %v1106_v53, %v1103_v32  ;;  %v1130_v23 = vshrl.u32 %v1129_v31, 23  ;;  %v2690_v40 = vmov 683565275  }
  0xf9   : > { %v1344_v48 = vand.u32 8388607, %v1337_v61  ;;  %v1341_v29 = vshrl.u32 %v1340_v27, 23  ;;  %v1134_v6 = vor.u32 8388608, %v1133_v3  ;;  %v2691_v39 = vmov 2475754826  }
  0xfa   : > { %v1121_v20 = vadd.f32 %v1120_v13, %v1117_v59  ;;  %v2311_v62 = vadd.s32 4294967169, %v1130_v23  ;;  %v1553_v19 = vand.u32 2139095040, %v3619_v12  ;;  %v2692_v22 = vmov 2131351028  }
  0xfb   : > { %v1345_v30 = vor.u32 8388608, %v1344_v48  ;;  %v2319_v4 = vadd.s32 4294967169, %v1341_v29  ;;  %v3630_v49 = vshll.u32 %v1134_v6, 8  ;;  %v2693_v51 = vmov 2102212464  }
  0xfc   : > { %v3625_v34 = vadd.f32 %v1124_v9, %v1121_v20  ;;  %v1136_v60 = vadd.s32 1, %v2311_v62  ;;  %v1554_v25 = vshrl.u32 %v1553_v19, 23  ;;  %v2694_v0 = vmov 920167782  }
  0xfd   : > { %v1347_v63 = vadd.s32 1, %v2319_v4  ;;  %v3632_v47 = vshll.u32 %v1345_v30, 8  ;;  %v2695_v14 = vmov 1326507024   ;;  %vm1128_vm7 = vcmp.lt.s32.totalorder %v3608_v37, 0 }
  0xfe   : > { %vm1137_vm14 = vcmp.gt.s32.totalorder %v1136_v60, 0  ;;  %v2329_v10 = vadd.s32 4294967169, %v1554_v25  ;;  %vm3721_vm9 = vcmp.le.f32.partialorder %v1126_v36, 0.7853982 }
  0xff   : > { %v1138_v1 = vsel %vm1137_vm14, %v1136_v60, 0  ;;  %vm1348_vm8 = vcmp.gt.s32.totalorder %v1347_v63, 0 }
 0x100   : > { %v1139_v43 = vshrl.u32 %v1138_v1, 5  ;;  %v1140_v21 = vand.u32 31, %v1138_v1  ;;  %v1349_v7 = vsel %vm1348_vm8, %v1347_v63, 0  ;;  %v1560_v48 = vadd.s32 1, %v2329_v10 }
 0x101   : > { %v1350_v31 = vshrl.u32 %v1349_v7, 5  ;;  %v1351_v20 = vand.u32 31, %v1349_v7  ;;  %vm1339_vm8 = vcmp.lt.s32.totalorder %v3616_v42, 0 }
 0x102   : > { %v1141_v18 = vsub.s32 32, %v1140_v21  ;;  %v1143_v41 = vshll.u32 %v2690_v40, %v1140_v21  ;;  %v1146_v44 = vshll.u32 %v2691_v39, %v1140_v21  ;;  %v1149_v11 = vshll.u32 %v2692_v22, %v1140_v21 }
 0x103   : > { %v1152_v15 = vshll.u32 %v2693_v51, %v1140_v21  ;;  %v1155_v45 = vshll.u32 %v2694_v0, %v1140_v21  ;;  %vm1158_vm2 = vcmp.lt.s32.totalorder %v1139_v43, 1  ;;  %vm1159_vm11 = vcmp.lt.s32.totalorder %v1139_v43, 2 }
 0x104   : > { %v1142_v26 = vshrl.u32 %v2690_v40, %v1141_v18  ;;  %v1144_v17 = vshrl.u32 %v2691_v39, %v1141_v18  ;;  %v1147_v2 = vshrl.u32 %v2692_v22, %v1141_v18  ;;  %v1150_v33 = vshrl.u32 %v2693_v51, %v1141_v18 }
 0x105   : > { %v1153_v50 = vshrl.u32 %v2694_v0, %v1141_v18  ;;  %v1156_v58 = vshrl.u32 %v2695_v14, %v1141_v18  ;;  %vm1161_vm3 = vcmp.lt.s32.totalorder %v1139_v43, 4  ;;  %vm1160_vm10 = vcmp.lt.s32.totalorder %v1139_v43, 3 }
 0x106   : > { %v1145_v8 = vor.u32 %v1144_v17, %v1143_v41  ;;  %v1148_v54 = vor.u32 %v1147_v2, %v1146_v44  ;;  %v1151_v5 = vor.u32 %v1150_v33, %v1149_v11  ;;  %v1352_v30 = vsub.s32 32, %v1351_v20 }
 0x107   : > { %v1154_v55 = vor.u32 %v1153_v50, %v1152_v15  ;;  %v1157_v38 = vor.u32 %v1156_v58, %v1155_v45  ;;  %v1354_v4 = vshll.u32 %v2690_v40, %v1351_v20  ;;  %v1357_v1 = vshll.u32 %v2691_v39, %v1351_v20 }
 0x108   : > { %v1162_v53 = vsel %vm1158_vm2, %v1142_v26, %v1145_v8  ;;  %v1163_v57 = vsel %vm1161_vm3, %v1151_v5, 2102212464  ;;  %v1166_v56 = vsel %vm1158_vm2, %v1145_v8, %v1148_v54  ;;  %v1170_v16 = vsel %vm1158_vm2, %v1148_v54, %v1151_v5 }
 0x109   : > { %v1164_v32 = vsel %vm1160_vm10, %v1148_v54, %v1163_v57  ;;  %v1167_v28 = vsel %vm1161_vm3, %v1154_v55, 920167782  ;;  %v1171_v13 = vsel %vm1161_vm3, %v1157_v38, 1326507024  ;;  %v1360_v25 = vshll.u32 %v2692_v22, %v1351_v20 }
 0x10a   : > { %v1165_v59 = vsel %vm1159_vm11, %v1162_v53, %v1164_v32  ;;  %v1168_v9 = vsel %vm1160_vm10, %v1151_v5, %v1167_v28  ;;  %v1172_v23 = vsel %vm1160_vm10, %v1154_v55, %v1171_v13  ;;  %v1363_v43 = vshll.u32 %v2693_v51, %v1351_v20 }
 0x10b   : > { %v1169_v3 = vsel %vm1159_vm11, %v1166_v56, %v1168_v9  ;;  %v1173_v62 = vsel %vm1159_vm11, %v1170_v16, %v1172_v23  ;;  %v1181_v27 = vmul.u32 %v3630_v49, %v1165_v59  ;;  %v1366_v21 = vshll.u32 %v2694_v0, %v1351_v20 }
 0x10c   : > { %v3653_v60 = vmul.u32.u64.low %v3630_v49, %v1173_v62  ;;  %v3654_v29 = vmul.u32.u64.high %v3630_v49, %v1173_v62, %v3653_v60  ;;  %v3657_v19 = vmul.u32.u64.low %v3630_v49, %v1169_v3  ;;  %v3658_v6 = vmul.u32.u64.high %v3630_v49, %v1169_v3, %v3657_v19 }
 0x10d   : > { %vm1369_vm1 = vcmp.lt.s32.totalorder %v1350_v31, 1  ;;  %vm1370_vm4 = vcmp.lt.s32.totalorder %v1350_v31, 2  ;;  %v1353_v63 = vshrl.u32 %v2690_v40, %v1352_v30  ;;  %v1355_v18 = vshrl.u32 %v2691_v39, %v1352_v30 }
 0x10e   : > { %v1358_v49 = vshrl.u32 %v2692_v22, %v1352_v30  ;;  %v1361_v41 = vshrl.u32 %v2693_v51, %v1352_v30  ;;  %vm1183_vm6 = vc.u32 %v3654_v29, %v3657_v19  ;;  %v1184_v44 = vadd.s32 1, %v3658_v6 }
 0x10f   : > { %v1364_v11 = vshrl.u32 %v2694_v0, %v1352_v30  ;;  %vm1371_vm13 = vcmp.lt.s32.totalorder %v1350_v31, 3  ;;  %v1356_v15 = vor.u32 %v1355_v18, %v1354_v4  ;;  %v1367_v26 = vshrl.u32 %v2695_v14, %v1352_v30 }
 0x110   : > { %v1359_v45 = vor.u32 %v1358_v49, %v1357_v1  ;;  %v1362_v10 = vor.u32 %v1361_v41, %v1360_v25  ;;  %v1185_v17 = vsel %vm1183_vm6, %v1184_v44, %v3658_v6  ;;  %vm1372_vm15 = vcmp.lt.s32.totalorder %v1350_v31, 4 }
 0x111   : > { %v1365_v2 = vor.u32 %v1364_v11, %v1363_v43  ;;  %vm1561_vm5 = vcmp.gt.s32.totalorder %v1560_v48, 0  ;;  %v1186_v33 = vadd.s32 %v1185_v17, %v1181_v27  ;;  %v1368_v50 = vor.u32 %v1367_v26, %v1366_v21 }
 0x112   : > { %v1373_v58 = vsel %vm1369_vm1, %v1353_v63, %v1356_v15  ;;  %v1374_v8 = vsel %vm1372_vm15, %v1362_v10, 2102212464  ;;  %v1377_v5 = vsel %vm1369_vm1, %v1356_v15, %v1359_v45  ;;  %v1381_v38 = vsel %vm1369_vm1, %v1359_v45, %v1362_v10 }
 0x113   : > { %v1375_v54 = vsel %vm1371_vm13, %v1359_v45, %v1374_v8  ;;  %v1378_v55 = vsel %vm1372_vm15, %v1365_v2, 920167782  ;;  %v1187_v7 = vadd.s32 536870912, %v1186_v33  ;;  %v1382_v57 = vsel %vm1372_vm15, %v1368_v50, 1326507024 }
 0x114   : > { %v1379_v53 = vsel %vm1371_vm13, %v1362_v10, %v1378_v55  ;;  %v1550_v56 = vand.u32 2147483647, %v3619_v12  ;;  %v1376_v16 = vsel %vm1370_vm4, %v1373_v58, %v1375_v54  ;;  %v1383_v28 = vsel %vm1371_vm13, %v1365_v2, %v1382_v57 }
 0x115   : > { %v1380_v32 = vsel %vm1370_vm4, %v1377_v5, %v1379_v53  ;;  %v1562_v13 = vsel %vm1561_vm5, %v1560_v48, 0  ;;  %v1188_v59 = vshrl.u32 %v1187_v7, 30  ;;  %v1384_v9 = vsel %vm1370_vm4, %v1381_v38, %v1383_v28 }
 0x116   : > { %v3688_v23 = vmul.u32.u64.low %v3632_v47, %v1380_v32  ;;  %v3689_v20 = vmul.u32.u64.high %v3632_v47, %v1380_v32, %v3688_v23  ;;  %v3693_v3 = vmul.u32.u64.low %v3632_v47, %v1384_v9  ;;  %v3694_v62 = vmul.u32.u64.high %v3632_v47, %v1384_v9, %v3693_v3 }
 0x117   : > { %v1189_v27 = vshll.u32 %v1188_v59, 30  ;;  %v1564_v60 = vand.u32 31, %v1562_v13  ;;  %v1392_v6 = vmul.u32 %v3632_v47, %v1376_v16  ;;  %v1557_v31 = vand.u32 8388607, %v1550_v56 }
 0x118   : > { %v1395_v4 = vadd.s32 1, %v3689_v20  ;;  %vm1394_vm0 = vc.u32 %v3694_v62, %v3688_v23  ;;  %v1763_v18 = vand.u32 2147483647, %v3625_v34  ;;  %v1563_v17 = vshrl.u32 %v1562_v13, 5 }
 0x119   : > { %v1190_v30 = vsub.s32 %v1186_v33, %v1189_v27  ;;  %v1565_v25 = vsub.s32 32, %v1564_v60  ;;  %v1558_v63 = vor.u32 8388608, %v1557_v31  ;;  %v1567_v49 = vshll.u32 %v2690_v40, %v1564_v60 }
 0x11a   : > { %v1396_v1 = vsel %vm1394_vm0, %v1395_v4, %v3689_v20  ;;  %v1570_v41 = vshll.u32 %v2691_v39, %v1564_v60  ;;  %v1573_v44 = vshll.u32 %v2692_v22, %v1564_v60  ;;  %v1576_v2 = vshll.u32 %v2693_v51, %v1564_v60 }
 0x11b   : > { %v1192_v48 = vsub.s32 0, %v1190_v30  ;;  %v1397_v43 = vadd.s32 %v1396_v1, %v1392_v6  ;;  %v1568_v15 = vshrl.u32 %v2691_v39, %v1565_v25  ;;  %v1571_v45 = vshrl.u32 %v2692_v22, %v1565_v25 }
 0x11c   : > { %v1574_v10 = vshrl.u32 %v2693_v51, %v1565_v25  ;;  %v1577_v33 = vshrl.u32 %v2694_v0, %v1565_v25  ;;  %v1182_v50 = vadd.s32 %v3657_v19, %v3654_v29  ;;  %v1212_v8 = vsub.s32 4, %v1188_v59 }
 0x11d   : > { %v2312_v21 = vmin.u32 %v1192_v48, %v1190_v30  ;;  %v1398_v47 = vadd.s32 536870912, %v1397_v43  ;;  %v3717_v54 = vshll.u32 %v1558_v63, 8  ;;  %v1566_v38 = vshrl.u32 %v2690_v40, %v1565_v25 }
 0x11e   : > { %v1579_v7 = vshll.u32 %v2694_v0, %v1564_v60  ;;  %v1580_v53 = vshrl.u32 %v2695_v14, %v1565_v25  ;;  %v1569_v29 = vor.u32 %v1568_v15, %v1567_v49  ;;  %v1572_v19 = vor.u32 %v1571_v45, %v1570_v41 }
 0x11f   : > { %v1194_v11 = vclz %v2312_v21  ;;  %v3711_v26 = vshrl.u32 %v1398_v47, 30  ;;  %v1575_v57 = vor.u32 %v1574_v10, %v1573_v44  ;;  %v1578_v28 = vor.u32 %v1577_v33, %v1576_v2 }
 0x120   : > { %vm1585_vm14 = vcmp.lt.s32.totalorder %v1563_v17, 4  ;;  %v1581_v27 = vor.u32 %v1580_v53, %v1579_v7  ;;  %vm1582_vm2 = vcmp.lt.s32.totalorder %v1563_v17, 1  ;;  %v1766_v60 = vand.u32 2139095040, %v3625_v34 }
 0x121   : > { %v2313_v58 = vadd.s32 4294967294, %v1194_v11  ;;  %v1400_v55 = vshll.u32 %v3711_v26, 30  ;;  %v1587_v20 = vsel %vm1585_vm14, %v1575_v57, 2102212464  ;;  %v1213_v31 = vsel %vm1128_vm7, %v1212_v8, %v1188_v59 }
 0x122   : > { %vm1584_vm11 = vcmp.lt.s32.totalorder %v1563_v17, 3  ;;  %vm1583_vm3 = vcmp.lt.s32.totalorder %v1563_v17, 2  ;;  %v1590_v21 = vsel %vm1582_vm2, %v1569_v29, %v1572_v19  ;;  %v1591_v63 = vsel %vm1585_vm14, %v1578_v28, 920167782 }
 0x123   : > { %vm2314_vm12 = vcmp.lt.s32.totalorder %v2313_v58, 0  ;;  %v3729_v32 = vsub.s32 %v1397_v43, %v1400_v55  ;;  %v1588_v1 = vsel %vm1584_vm11, %v1572_v19, %v1587_v20  ;;  %v1592_v49 = vsel %vm1584_vm11, %v1575_v57, %v1591_v63 }
 0x124   : > { %v1197_v16 = vsel %vm2314_vm12, 0, %v2313_v58  ;;  %v1594_v59 = vsel %vm1582_vm2, %v1572_v19, %v1575_v57  ;;  %v1595_v41 = vsel %vm1585_vm14, %v1581_v27, 1326507024  ;;  %v1215_v15 = vsel %vm3721_vm9, 0, %v1213_v31 }
 0x125   : > { %v1198_v36 = vsub.s32 32, %v1197_v16  ;;  %v1199_v13 = vshll.u32 %v1190_v30, %v1197_v16  ;;  %v1202_v9 = vsub.s32 4294967266, %v1197_v16  ;;  %v1403_v3 = vsub.s32 0, %v3729_v32 }
 0x126   : > { %v1586_v30 = vsel %vm1582_vm2, %v1566_v38, %v1569_v29  ;;  %v1767_v45 = vshrl.u32 %v1766_v60, 23  ;;  %v1593_v33 = vsel %vm1583_vm3, %v1590_v21, %v1592_v49  ;;  %v1393_v7 = vadd.s32 %v3688_v23, %v3694_v62 }
 0x127   : > { %v1200_v6 = vshrl.u32 %v1182_v50, %v1198_v36  ;;  %v1203_v4 = vadd.s32 127, %v1202_v9  ;;  %v2320_v48 = vmin.u32 %v1403_v3, %v3729_v32  ;;  %v1589_v2 = vsel %vm1583_vm3, %v1586_v30, %v1588_v1 }
 0x128   : > { %v1596_v50 = vsel %vm1584_vm11, %v1578_v28, %v1595_v41  ;;  %v3752_v55 = vmul.u32.u64.low %v3717_v54, %v1593_v33  ;;  %v3753_v38 = vmul.u32.u64.high %v3717_v54, %v1593_v33, %v3752_v55  ;;  %v1423_v16 = vsub.s32 4, %v3711_v26 }
 0x129   : > { %v1201_v25 = vor.u32 %v1200_v6, %v1199_v13  ;;  %v1204_v43 = vshll.u32 %v1203_v4, 23  ;;  %v1405_v47 = vclz %v2320_v48  ;;  %v1597_v8 = vsel %vm1583_vm3, %v1594_v59, %v1596_v50 }
 0x12a   : > { %v3759_v53 = vmul.u32.u64.low %v3717_v54, %v1597_v8  ;;  %v3760_v29 = vmul.u32.u64.high %v3717_v54, %v1597_v8, %v3759_v53  ;;  %v2339_v28 = vadd.s32 4294967169, %v1767_v45  ;;  %v1605_v9 = vmul.u32 %v3717_v54, %v1589_v2 }
 0x12b   : > { %v1205_v44 = vor.u32 4788187, %v1204_v43  ;;  %v1208_v11 = vcvt.s32.f32 %v1201_v25  ;;  %v2321_v10 = vadd.s32 4294967294, %v1405_v47  ;;  %v1608_v3 = vadd.s32 1, %v3753_v38 }
 0x12c   : > { %v3768_v23 = vand.u32 8388607, %v1763_v18  ;;  %v1773_v62 = vadd.s32 1, %v2339_v28  ;;  %v1324_v27 = vadd.s32 3, %v1215_v15  ;;  %vm1607_vm1 = vc.u32 %v3760_v29, %v3752_v55 }
 0x12d   : > { %v1206_v58 = vand.u32 2147483647, %v1205_v44  ;;  %vm2322_vm10 = vcmp.lt.s32.totalorder %v2321_v10, 0  ;;  %v1424_v54 = vsel %vm1339_vm8, %v1423_v16, %v3711_v26  ;;  %v1609_v4 = vsel %vm1607_vm1, %v1608_v3, %v3753_v38 }
 0x12e   : > { %v1408_v57 = vsel %vm2322_vm10, 0, %v2321_v10  ;;  %vm1774_vm4 = vcmp.gt.s32.totalorder %v1773_v62, 0  ;;  %v1610_v1 = vadd.s32 %v1609_v4, %v1605_v9  ;;  %v3781_v25 = vand.u32 3, %v1215_v15 }
 0x12f   : > { %v1209_v19 = vmul.f32 %v1208_v11, %v1206_v58  ;;  %v1409_v17 = vsub.s32 32, %v1408_v57  ;;  %v1410_v36 = vshll.u32 %v3729_v32, %v1408_v57  ;;  %v1413_v13 = vsub.s32 4294967266, %v1408_v57 }
 0x130   : > { %vm3785_vm6 = vcmp.le.f32.partialorder %v1337_v61, 0.7853982  ;;  %v1775_v26 = vsel %vm1774_vm4, %v1773_v62, 0  ;;  %v1611_v47 = vadd.s32 536870912, %v1610_v1  ;;  %v1325_v59 = vand.u32 3, %v1324_v27 }
 0x131   : > { %v1210_v20 = vxor.u32 2147483648, %v1209_v19  ;;  %v1411_v60 = vshrl.u32 %v1393_v7, %v1409_v17  ;;  %v1414_v6 = vadd.s32 127, %v1413_v13  ;;  %v1426_v5 = vsel %vm3785_vm6, 0, %v1424_v54 }
 0x132   : > { %v1777_v49 = vand.u32 31, %v1775_v26  ;;  %v3791_v44 = vshrl.u32 %v1611_v47, 30  ;;  %v1771_v11 = vor.u32 8388608, %v3768_v23  ;;  %vm1220_vm13 = vcmp.lt.s32.totalorder %v3781_v25, 2 }
 0x133   : > { %v1211_v32 = vsel %vm1128_vm7, %v1210_v20, %v1209_v19  ;;  %v1412_v48 = vor.u32 %v1411_v60, %v1410_v36  ;;  %v1415_v30 = vshll.u32 %v1414_v6, 23  ;;  %vm1218_vm15 = vweird.f32 %v3608_v37 }
 0x134   : > { %v1214_v31 = vsel %vm3721_vm9, %v3608_v37, %v1211_v32  ;;  %v1778_v61 = vsub.s32 32, %v1777_v49  ;;  %v1780_v15 = vshll.u32 %v2690_v40, %v1777_v49  ;;  %v1783_v45 = vshll.u32 %v2691_v39, %v1777_v49 }
 0x135   : > { %2500 = vcosq.f32 %v1214_v31  ;;  %v1416_v21 = vor.u32 4788187, %v1415_v30  ;;  %v1419_v63 = vcvt.s32.f32 %v1412_v48  ;;  %v1786_v10 = vshll.u32 %v2692_v22, %v1777_v49 }
 0x136   : > { %2502 = vsinq.f32 %v1214_v31  ;;  %vm1221_vm5 = vcmp.eq.s32.totalorder %v3781_v25, 0  ;;  %v1536_v33 = vadd.s32 3, %v1426_v5  ;;  %v1613_v50 = vshll.u32 %v3791_v44, 30 }
 0x137   : > { %v1417_v41 = vand.u32 2147483647, %v1416_v21  ;;  %v1781_v58 = vshrl.u32 %v2691_v39, %v1778_v61  ;;  %v1784_v8 = vshrl.u32 %v2692_v22, %v1778_v61  ;;  %v1787_v38 = vshrl.u32 %v2693_v51, %v1778_v61 }
 0x138   : > { %v1789_v7 = vshll.u32 %v2693_v51, %v1777_v49  ;;  %vm1224_vm0 = vcmp.eq.s32.totalorder %v3781_v25, 2  ;;  %v3806_v19 = vsub.s32 %v1610_v1, %v1613_v50  ;;  %v1790_v57 = vshrl.u32 %v2694_v0, %v1778_v61 }
 0x139   : > { %v1420_v2 = vmul.f32 %v1419_v63, %v1417_v41  ;;  %vm1330_vm7 = vcmp.eq.s32.totalorder %v1325_v59, 2  ;;  %v1782_v16 = vor.u32 %v1781_v58, %v1780_v15  ;;  %v1785_v28 = vor.u32 %v1784_v8, %v1783_v45 }
 0x13a   : > { %v3809_v17 = vor.u32 %v1787_v38, %v1786_v10  ;;  %v3813_v22 = vand.u32 3, %v1426_v5  ;;  %v3815_v36 = vand.u32 3, %v1536_v33  ;;  %v1616_v51 = vsub.s32 0, %v3806_v19 }
 0x13b   : > { %v1421_v53 = vxor.u32 2147483648, %v1420_v2  ;;  %v3821_v20 = vor.u32 %v1790_v57, %v1789_v7  ;;  %v1792_v3 = vshll.u32 %v2694_v0, %v1777_v49  ;;  %v1793_v62 = vshrl.u32 %v2695_v14, %v1778_v61 }
 0x13c   : > { %vm1327_vm9 = vcmp.eq.s32.totalorder %v1325_v59, 0  ;;  %v2330_v6 = vmin.u32 %v1616_v51, %v3806_v19  ;;  %vm1326_vm12 = vcmp.lt.s32.totalorder %v1325_v59, 2  ;;  %v1776_v54 = vshrl.u32 %v1775_v26, 5 }
 0x13d   : > { %v1422_v39 = vsel %vm1339_vm8, %v1421_v53, %v1420_v2  ;;  %vm1435_vm14 = vcmp.eq.s32.totalorder %v3813_v22, 2  ;;  %vm1432_vm2 = vcmp.eq.s32.totalorder %v3813_v22, 0  ;;  %vm1539_vm11 = vcmp.eq.s32.totalorder %v3815_v36, 0 }
 0x13e   : > { %v1425_v9 = vsel %vm3785_vm6, %v3616_v42, %v1422_v39  ;;  %v1618_v0 = vclz %v2330_v6  ;;  %v1779_v30 = vshrl.u32 %v2690_v40, %v1778_v61  ;;  %v1794_v1 = vor.u32 %v1793_v62, %v1792_v3 }
 0x13f   : > { %v2501_v13 = vpop.eup %2500  ;;  %2504 = vcosq.f32 %v1425_v9  ;;  %vm1431_vm3 = vcmp.lt.s32.totalorder %v3813_v22, 2  ;;  %vm1538_vm8 = vcmp.lt.s32.totalorder %v3815_v36, 2  ;;  %vm1542_vm10 = vcmp.eq.s32.totalorder %v3815_v36, 2 }
 0x140   : > { %v2503_v27 = vpop.eup %2502  ;;  %v1225_v60 = vxor.u32 2147483648, %v2501_v13  ;;  %2506 = vsinq.f32 %v1425_v9  ;;  %v2331_v21 = vadd.s32 4294967294, %v1618_v0  ;;  %v1606_v63 = vadd.s32 %v3752_v55, %v3760_v29 }
 0x141   : > { %v1222_v32 = vxor.u32 2147483648, %v2503_v27  ;;  %vm1795_vm1 = vcmp.lt.s32.totalorder %v1776_v54, 1  ;;  %vm1796_vm6 = vcmp.lt.s32.totalorder %v1776_v54, 2 }
 0x142   : > { %v1226_v4 = vsel %vm1224_vm0, %v1225_v60, %v2503_v27  ;;  %v1332_v31 = vsel %vm1330_vm7, %v1225_v60, %v2503_v27  ;;  %vm2332_vm4 = vcmp.lt.s32.totalorder %v2331_v21, 0  ;;  %v1799_v59 = vsel %vm1795_vm1, %v1779_v30, %v1782_v16 }
 0x143   : > { %v1223_v14 = vsel %vm1221_vm5, %v2501_v13, %v1222_v32  ;;  %v1329_v48 = vsel %vm1327_vm9, %v2501_v13, %v1222_v32  ;;  %v1621_v49 = vsel %vm2332_vm4, 0, %v2331_v21  ;;  %vm1798_vm5 = vcmp.lt.s32.totalorder %v1776_v54, 4 }
 0x144   : > { %v1227_v43 = vsel %vm1220_vm13, %v1223_v14, %v1226_v4  ;;  %v1333_v26 = vsel %vm1326_vm12, %v1329_v48, %v1332_v31  ;;  %vm1797_vm13 = vcmp.lt.s32.totalorder %v1776_v54, 3  ;;  %v1622_v41 = vsub.s32 32, %v1621_v49 }
 0x145   : > { %v1228_v40 = vsel %vm1218_vm15, nan, %v1227_v43  ;;  %v1334_v25 = vsel %vm1218_vm15, nan, %v1333_v26  ;;  %v1623_v37 = vshll.u32 %v3806_v19, %v1621_v49  ;;  %v1626_v61 = vsub.s32 4294967266, %v1621_v49 }
 0x146   : > { %v1229_v47 = vmul.f32 %v1228_v40, %v3319_v52  ;;  %v1335_v5 = vmul.f32 %v1334_v25, %v3319_v52  ;;  %v1800_v55 = vsel %vm1798_vm5, %v3809_v17, 2102212464  ;;  %v1803_v52 = vsel %vm1795_vm1, %v1782_v16, %v1785_v28 }
 0x147   : > { %v1801_v29 = vsel %vm1797_vm13, %v1785_v28, %v1800_v55  ;;  %v1804_v15 = vsel %vm1798_vm5, %v3821_v20, 920167782  ;;  %v1807_v45 = vsel %vm1795_vm1, %v1785_v28, %v3809_v17  ;;  %v1624_v2 = vshrl.u32 %v1606_v63, %v1622_v41 }
 0x148   : > { %1230 = vst [vmem:[%s3844_s22] sm:$0x3] %v1229_v47  ;;  %1336 = vst [vmem:[%s3850_s29] sm:$0x3] %v1335_v5  ;;  %v1627_v33 = vadd.s32 127, %v1626_v61  ;;  %v1802_v50 = vsel %vm1796_vm6, %v1799_v59, %v1801_v29  ;;  %v1805_v58 = vsel %vm1797_vm13, %v3809_v17, %v1804_v15  ;;  %v1808_v53 = vsel %vm1798_vm5, %v1794_v1, 1326507024 }
 0x149   : > { %v2505_v10 = vpop.eup %2504  ;;  %v1806_v7 = vsel %vm1796_vm6, %v1803_v52, %v1805_v58  ;;  %v1811_v19 = vshll.u32 %v1771_v11, 8  ;;  %v1625_v16 = vor.u32 %v1624_v2, %v1623_v37  ;;  %v1809_v39 = vsel %vm1797_vm13, %v3821_v20, %v1808_v53 }
 0x14a   : > { %v2507_v8 = vpop.eup %2506  ;;  %v1436_v38 = vxor.u32 2147483648, %v2505_v10  ;;  %v1628_v28 = vshll.u32 %v1627_v33, 23  ;;  %vm1429_vm15 = vweird.f32 %v3616_v42  ;;  %v1810_v13 = vsel %vm1796_vm6, %v1807_v45, %v1809_v39 }
 0x14b   : > { %v1433_v57 = vxor.u32 2147483648, %v2507_v8  ;;  %v1632_v20 = vcvt.s32.f32 %v1625_v16  ;;  %v3895_v62 = vmul.u32.u64.low %v1811_v19, %v1810_v13  ;;  %v3896_v27 = vmul.u32.u64.high %v1811_v19, %v1810_v13, %v3895_v62 }
 0x14c   : > { %v1437_v17 = vsel %vm1435_vm14, %v1436_v38, %v2507_v8  ;;  %v1544_v51 = vsel %vm1542_vm10, %v1436_v38, %v2507_v8  ;;  %v1629_v9 = vor.u32 4788187, %v1628_v28  ;;  %v1636_v54 = vsub.s32 4, %v3791_v44 }
 0x14d   : > { %v1434_v23 = vsel %vm1432_vm2, %v2505_v10, %v1433_v57  ;;  %v1541_v11 = vsel %vm1539_vm11, %v2505_v10, %v1433_v57  ;;  %v3901_v0 = vmul.u32.u64.low %v1811_v19, %v1806_v7  ;;  %v3902_v14 = vmul.u32.u64.high %v1811_v19, %v1806_v7, %v3901_v0 }
 0x14e   : > { %v1438_v42 = vsel %vm1431_vm3, %v1434_v23, %v1437_v17  ;;  %v1545_v3 = vsel %vm1538_vm8, %v1541_v11, %v1544_v51  ;;  %v1630_v32 = vand.u32 2147483647, %v1629_v9  ;;  %vm1552_vm0 = vcmp.lt.s32.totalorder %v3619_v12, 0 }
 0x14f   : > { %v1439_v60 = vsel %vm1429_vm15, nan, %v1438_v42  ;;  %v1546_v6 = vsel %vm1429_vm15, nan, %v1545_v3  ;;  %v1819_v36 = vadd.s32 %v3901_v0, %v3896_v27  ;;  %vm1820_vm7 = vc.u32 %v3896_v27, %v3901_v0 }
 0x150   : > { %v1440_v4 = vmul.f32 %v1439_v60, %v3408_v35  ;;  %v1547_v31 = vmul.f32 %v1546_v6, %v3408_v35  ;;  %v1633_v22 = vmul.f32 %v1632_v20, %v1630_v32  ;;  %vm1551_vm9 = vcmp.le.f32.partialorder %v1550_v56, 0.7853982 }
 0x151   : > { %v1637_v30 = vsel %vm1552_vm0, %v1636_v54, %v3791_v44  ;;  %v1818_v1 = vmul.u32 %v1811_v19, %v1802_v50  ;;  %v1821_v35 = vadd.s32 1, %v3902_v14  ;;  %vm1642_vm10 = vweird.f32 %v3619_v12 }
 0x152   : > { %2323 = vst [vmem:[%s3844_s22 + $0x2] sm:$0x3] %v1440_v4  ;;  %2328 = vst [vmem:[%s3850_s29 + $0x2] sm:$0x3] %v1547_v31  ;;  %v1634_v48 = vxor.u32 2147483648, %v1633_v22  ;;  %v1639_v21 = vsel %vm1551_vm9, 0, %v1637_v30 }
 0x153   : > { %v1822_v40 = vsel %vm1820_vm7, %v1821_v35, %v3902_v14  ;;  %v1749_v63 = vadd.s32 3, %v1639_v21  ;;  %v1643_v49 = vand.u32 3, %v1639_v21  ;;  %vm1765_vm4 = vcmp.lt.s32.totalorder %v3625_v34, 0 }
 0x154   : > { %v1635_v43 = vsel %vm1552_vm0, %v1634_v48, %v1633_v22  ;;  %v1823_v25 = vadd.s32 %v1822_v40, %v1818_v1  ;;  %vm1764_vm6 = vcmp.le.f32.partialorder %v1763_v18, 0.7853982 }
 0x155   : > { %v1638_v26 = vsel %vm1551_vm9, %v3619_v12, %v1635_v43  ;;  %v1750_v56 = vand.u32 3, %v1749_v63  ;;  %vm1648_vm12 = vcmp.eq.s32.totalorder %v1643_v49, 2  ;;  %vm1645_vm2 = vcmp.eq.s32.totalorder %v1643_v49, 0 }
 0x156   : > { %2508 = vcosq.f32 %v1638_v26  ;;  %v1824_v47 = vadd.s32 536870912, %v1823_v25  ;;  %vm1644_vm3 = vcmp.lt.s32.totalorder %v1643_v49, 2 }
 0x157   : > { %2510 = vsinq.f32 %v1638_v26  ;;  %vm1755_vm14 = vcmp.eq.s32.totalorder %v1750_v56, 2  ;;  %vm1752_vm11 = vcmp.eq.s32.totalorder %v1750_v56, 0  ;;  %vm1751_vm8 = vcmp.lt.s32.totalorder %v1750_v56, 2 }
 0x158   : > { %v1825_v5 = vshrl.u32 %v1824_v47, 30 }
 0x15a   : > { %v1826_v59 = vshll.u32 %v1825_v5, 30  ;;  %v1849_v20 = vsub.s32 4, %v1825_v5 }
 0x15c   : > { %v1827_v41 = vsub.s32 %v1823_v25, %v1826_v59  ;;  %v1850_v3 = vsel %vm1765_vm4, %v1849_v20, %v1825_v5 }
 0x15d   : > { %v1852_v60 = vsel %vm1764_vm6, 0, %v1850_v3 }
 0x15e   : > { %v1829_v37 = vsub.s32 0, %v1827_v41  ;;  %v1962_v6 = vadd.s32 3, %v1852_v60  ;;  %v1856_v32 = vand.u32 3, %v1852_v60 }
 0x160   : > { %v2509_v44 = vpop.eup %2508  ;;  %v2340_v52 = vmin.u32 %v1829_v37, %v1827_v41  ;;  %v1963_v54 = vand.u32 3, %v1962_v6  ;;  %vm1861_vm13 = vcmp.eq.s32.totalorder %v1856_v32, 2  ;;  %vm1858_vm15 = vcmp.eq.s32.totalorder %v1856_v32, 0 }
 0x161   : > { %v2511_v61 = vpop.eup %2510  ;;  %v1649_v55 = vxor.u32 2147483648, %v2509_v44  ;;  %vm1857_vm7 = vcmp.lt.s32.totalorder %v1856_v32, 2 }
 0x162   : > { %v1646_v29 = vxor.u32 2147483648, %v2511_v61  ;;  %v1831_v33 = vclz %v2340_v52  ;;  %vm1968_vm5 = vcmp.eq.s32.totalorder %v1963_v54, 2  ;;  %vm1965_vm0 = vcmp.eq.s32.totalorder %v1963_v54, 0 }
 0x163   : > { %v1650_v15 = vsel %vm1648_vm12, %v1649_v55, %v2511_v61  ;;  %v1757_v45 = vsel %vm1755_vm14, %v1649_v55, %v2511_v61  ;;  %vm1964_vm9 = vcmp.lt.s32.totalorder %v1963_v54, 2  ;;  %vm1855_vm12 = vweird.f32 %v3625_v34 }
 0x164   : > { %v1647_v10 = vsel %vm1645_vm2, %v2509_v44, %v1646_v29  ;;  %v1754_v2 = vsel %vm1752_vm11, %v2509_v44, %v1646_v29  ;;  %v2341_v7 = vadd.s32 4294967294, %v1831_v33 }
 0x165   : > { %v1651_v50 = vsel %vm1644_vm3, %v1647_v10, %v1650_v15  ;;  %v1758_v58 = vsel %vm1751_vm8, %v1754_v2, %v1757_v45 }
 0x166   : > { %v1652_v8 = vsel %vm1642_vm10, nan, %v1651_v50  ;;  %v1759_v38 = vsel %vm1642_vm10, nan, %v1758_v58  ;;  %vm2342_vm1 = vcmp.lt.s32.totalorder %v2341_v7, 0 }
 0x167   : > { %v1653_v53 = vmul.f32 %v1652_v8, %v3488_v46  ;;  %v1760_v19 = vmul.f32 %v1759_v38, %v3488_v46  ;;  %v1834_v57 = vsel %vm2342_vm1, 0, %v2341_v7 }
 0x168   : > { %v1835_v16 = vsub.s32 32, %v1834_v57  ;;  %v1836_v12 = vshll.u32 %v1827_v41, %v1834_v57  ;;  %v1839_v28 = vsub.s32 4294967266, %v1834_v57 }
 0x169   : > { %2333 = vst [vmem:[%s3844_s22 + $0x4] sm:$0x3] %v1653_v53  ;;  %2338 = vst [vmem:[%s3850_s29 + $0x4] sm:$0x3] %v1760_v19 }
 0x16a   : > { %v1837_v39 = vshrl.u32 %v1819_v36, %v1835_v16  ;;  %v1840_v17 = vadd.s32 127, %v1839_v28 }
 0x16c   : > { %v1838_v51 = vor.u32 %v1837_v39, %v1836_v12  ;;  %v1841_v13 = vshll.u32 %v1840_v17, 23 }
 0x16e   : > { %v1842_v23 = vor.u32 4788187, %v1841_v13  ;;  %v1845_v11 = vcvt.s32.f32 %v1838_v51 }
 0x170   : > { %v1843_v9 = vand.u32 2147483647, %v1842_v23 }
 0x172   : > { %v1846_v42 = vmul.f32 %v1845_v11, %v1843_v9 }
 0x174   : > { %v1847_v46 = vxor.u32 2147483648, %v1846_v42 }
 0x176   : > { %v1848_v62 = vsel %vm1765_vm4, %v1847_v46, %v1846_v42 }
 0x177   : > { %v1851_v27 = vsel %vm1764_vm6, %v3625_v34, %v1848_v62 }
 0x178   : > { %2512 = vcosq.f32 %v1851_v27 }
 0x179   : > { %2514 = vsinq.f32 %v1851_v27 }
 0x182   : > { %v2513_v4 = vpop.eup %2512 }
 0x183   : > { %v2515_v31 = vpop.eup %2514  ;;  %v1862_v0 = vxor.u32 2147483648, %v2513_v4 }
 0x184   : > { %v1859_v18 = vxor.u32 2147483648, %v2515_v31 }
 0x185   : > { %v1863_v14 = vsel %vm1861_vm13, %v1862_v0, %v2515_v31  ;;  %v1970_v22 = vsel %vm1968_vm5, %v1862_v0, %v2515_v31 }
 0x186   : > { %v1860_v36 = vsel %vm1858_vm15, %v2513_v4, %v1859_v18  ;;  %v1967_v48 = vsel %vm1965_vm0, %v2513_v4, %v1859_v18 }
 0x187   : > { %v1864_v30 = vsel %vm1857_vm7, %v1860_v36, %v1863_v14  ;;  %v1971_v1 = vsel %vm1964_vm9, %v1967_v48, %v1970_v22 }
 0x188   : > { %v1865_v35 = vsel %vm1855_vm12, nan, %v1864_v30  ;;  %v1972_v43 = vsel %vm1855_vm12, nan, %v1971_v1 }
 0x189   : > { %v1866_v26 = vmul.f32 %v1865_v35, %v3518_v24  ;;  %v1973_v21 = vmul.f32 %v1972_v43, %v3518_v24 }
 0x18b   : > { %2343 = vst [vmem:[%s3844_s22 + $0x6] sm:$0x3] %v1866_v26  ;;  %2348 = vst [vmem:[%s3850_s29 + $0x6] sm:$0x3] %v1973_v21 }
 0x18c PF: > { %s27_s19 = sadd.s32 1, %s2678_s19   ;;  %s3986_s17 = smov %s2674_s18 }
 0x18d   : > { %p24_p7 = scmp.ge.s32.totalorder %s27_s19, 4   ;;  %s3987_s18 = smov %s3989_s26 }
 0x18f   :  { %26 = sbr.rel (!%p24_p7) target bundleno = 8 (0x8), region = 150 }
 0x196   :  { %2025 = vsyncpa [#allocation3], 1 }
 0x197   :  { %2027 = vsyncpa [#allocation3 + $0x1], 1 }
 0x198   :  { %2028 = vsyncpa [#allocation5], 1 }
 0x199   :  { %2029 = vsyncpa [#allocation8], 1 }
 0x19a   :  { %2030 = vsyncpa [#allocation11], 1 }
 0x19b   :  { %2031 = vsyncpa [#allocation14], 1 }

</bundles_post_ra>
